<compile_context>
chip_gen: v7x
topology: tpu7x:2x2x1
jax: 0.10.0
libtpu: 0.0.40
codegen_flags: <defaults>
</compile_context>

<pallas_src>
import functools
import math

import jax
import jax.numpy as jnp
import numpy as np
from jax.experimental import pallas as pl
from jax.experimental.pallas import tpu as pltpu


def _mxu(a, b):
    """Single-pass MXU matmul (contract a's last dim with b's first):
    bf16 operands, f32 accumulation.  No-op cast for already-bf16 operands."""
    return jax.lax.dot_general(
        a.astype(jnp.bfloat16), b.astype(jnp.bfloat16),
        (((1,), (0,)), ((), ())),
        preferred_element_type=jnp.float32)


def _mxu_t(a, b):
    """MXU matmul contracting the leading (batch/sublane) dim of both
    operands: a^T @ b, directly in the orientation needed to gate/update
    buffer rows (no relayout of the result)."""
    return jax.lax.dot_general(
        a.astype(jnp.bfloat16), b.astype(jnp.bfloat16),
        (((0,), (0,)), ((), ())),
        preferred_element_type=jnp.float32)


def _idam_kernel(x_ref,        # VMEM (B, Din)       f32, step (h, t)
                 ctx_ref,      # VMEM (B, Dctx)      f32, step (h, t)
                 wkv_ref,      # VMEM (Din+Dctx, Dk+Dv) bf16, head-resident
                 bkv_ref,      # VMEM (1, Dk+Dv)     f32,  head-resident
                 protot_ref,   # VMEM (Dk, Nb)       bf16, = (2/tau) * p^T
                 psq_ref,      # VMEM (1, Nb)        f32,  = ||p||^2 / tau
                 buf0_ref,     # VMEM (Nb, Dv)       f32,  initial buffer state
                 r_ref,        # VMEM out (B, Dv)          retrieved, step (h, t)
                 buf_ref,      # VMEM out (Nb, Dv)   f32,  resident across T
                 *, din, dk, write_scale):
    """One (head h, timestep t) grid step of the read-then-write i-DAM cycle."""
    # Initialize the resident buffer accumulator from the initial state.
    @pl.when(pl.program_id(1) == 0)
    def _init():
        buf_ref[...] = buf0_ref[...]

    x = x_ref[...].astype(jnp.bfloat16)
    ctx = ctx_ref[...].astype(jnp.bfloat16)

    # Fused key/content projection: the fused (Din+Dctx, Dk+Dv) weight is
    # contracted in two sublane-aligned row slices (x and context stay
    # separate -> no concatenated activation); bias added in f32.
    km = (_mxu(x, wkv_ref[:din, :])
          + _mxu(ctx, wkv_ref[din:, :])
          + bkv_ref[...])                                  # (B, Dk+Dv) f32
    k = km[:, :dk]                                         # lane-aligned split when dk % 128 == 0
    m = km[:, dk:]

    # Kernel-softmax addressing.  Squared euclidean distance
    #   dist = ||k||^2 + ||p||^2 - 2 k.p ;
    # the per-row ||k||^2 term is a softmax shift and is dropped, prototypes
    # arrive pre-transposed and pre-scaled by 2/tau, ||p||^2 pre-scaled by
    # 1/tau, so logits = k @ protoT - psq with no per-step scaling.
    # (clamp(dist, 0) only fires on rounding-negative distances when a key
    #  coincides with a prototype; it is omitted -- effect below tolerance.)
    logits = _mxu(k, protot_ref[...]) - psq_ref[...]       # (B, Nb) f32
    logits = logits - jnp.max(logits, axis=-1, keepdims=True)
    e = jnp.exp(logits)
    attn = e * pl.reciprocal(jnp.sum(e, axis=-1, keepdims=True), approx=True)

    # --- read: r_t = attn @ buffer (buffer state BEFORE this step's write).
    buf = buf_ref[...]                                     # (Nb, Dv) f32
    attn_b = attn.astype(jnp.bfloat16)
    r_ref[...] = _mxu(attn_b, buf).astype(r_ref.dtype)

    # --- write: batch-averaged EMA update.  lambda/B is folded into the two
    # batch-reduction matmuls (no separate ws = lam*attn VPU pass).
    ones_col = jnp.ones((x.shape[0], 1), jnp.bfloat16)
    gate = _mxu_t(attn_b, ones_col) * write_scale          # (Nb, 1)  = lam * mean_b(attn)
    wc = _mxu_t(attn_b, m) * write_scale                   # (Nb, Dv) = lam * attn^T @ m / B
    # TODO(synk): keep this write path in f32 matmuls if long-horizon parity
    #             with an fp32 PyTorch buffer matters (bf16 operands drift).
    buf_ref[...] = jnp.maximum(1.0 - gate, 0.0) * buf + wc


def prepare_params(params, temperature=1.0):
    """One-time parameter prep (re-run only when weights / prototypes /
    temperature change; amortized over many steps):
      * key/content weights fused along the output axis, pre-cast to bf16,
      * prototypes pre-transposed to (Dk, Nb) and pre-scaled by 2/temperature,
      * squared prototype norms pre-scaled by 1/temperature, lane-major."""
    f32 = jnp.float32
    logit_scale = 2.0 / float(temperature)
    p = params["prototypes"].astype(f32)                                   # (H, Nb, Dk)
    return {
        "w_kv": jnp.concatenate([params["wk"], params["wm"]], axis=-1)
                  .astype(jnp.bfloat16),                                   # (H, comb, Dk+Dv)
        "b_kv": jnp.concatenate([params["bk"], params["bm"]], axis=-1)
                  .astype(f32),                                            # (H, 1, Dk+Dv)
        "proto_t": (jnp.swapaxes(p, -1, -2) * logit_scale)
                  .astype(jnp.bfloat16),                                   # (H, Dk, Nb)
        "psq": jnp.sum(p * p, axis=-1)[:, None, :] / float(temperature),   # (H, 1, Nb)
        "key_dim": int(params["wk"].shape[-1]),
    }


def idam_forward_seq(xs, ctxs, prep, buffer, learning_rate=0.1):
    """Run H independent i-DAM heads for T recurrent timesteps in one
    pallas_call.

    Args:
      xs:     (H, T, B, Din)  f32
      ctxs:   (H, T, B, Dctx) f32
      prep:   output of prepare_params (per-head fused weights etc.)
      buffer: (H, Nb, Dv)     f32, initial persistent memory state
    Returns:
      retrieved (H, T, B, Dv) in xs.dtype, reg_loss (None for default config),
      new_buffer (H, Nb, Dv) f32 — the buffer after all T write steps.
    """
    H, T, B, din = xs.shape
    dctx = ctxs.shape[-1]
    dkv = prep["w_kv"].shape[-1]
    dk = prep["key_dim"]
    dv = dkv - dk
    nb = prep["proto_t"].shape[-1]

    kernel = functools.partial(
        _idam_kernel, din=din, dk=dk,
        write_scale=float(learning_rate) / float(B))

    # Per-head resident operands (loaded once per head, reused for all T).
    def head_res(shape):
        return pl.BlockSpec(shape, lambda h, t: (h, 0, 0))

    # Per-(head, step) streamed blocks (double-buffered by the pipeline).
    def per_step(shape):
        return pl.BlockSpec(shape, lambda h, t: (h, t, 0, 0))

    in_specs = [
        per_step((None, None, B, din)),       # xs
        per_step((None, None, B, dctx)),      # ctxs
        head_res((None, din + dctx, dkv)),    # fused key|content weights (bf16)
        head_res((None, 1, dkv)),             # fused biases (f32)
        head_res((None, dk, nb)),             # (2/tau) * prototypes^T (bf16)
        head_res((None, 1, nb)),              # ||p||^2 / tau
        head_res((None, nb, dv)),             # initial buffer state
    ]
    out_specs = (
        per_step((None, None, B, dv)),        # retrieved
        head_res((None, nb, dv)),             # new_buffer (resident across T)
    )

    retrieved, new_buffer = pl.pallas_call(
        kernel,
        grid=(H, T),
        in_specs=in_specs,
        out_specs=out_specs,
        out_shape=(jax.ShapeDtypeStruct((H, T, B, dv), xs.dtype),
                   jax.ShapeDtypeStruct((H, nb, dv), jnp.float32)),
        compiler_params=pltpu.CompilerParams(
            # heads are independent -> shard across v7x's two TensorCores;
            # timesteps carry the recurrent buffer -> sequential.
            dimension_semantics=("parallel", "arbitrary")),
    )(xs, ctxs, prep["w_kv"], prep["b_kv"], prep["proto_t"], prep["psq"], buffer)

    return retrieved, None, new_buffer


def idam_forward(x, context, prep, buffer, learning_rate=0.1):
    """Single module forward step (B, Din), (B, Dctx) -> (B, Dv); equivalent to
    the gridded kernel with H=1, T=1.  `prep`/`buffer` must carry a leading
    head axis of size 1 (build params with num_heads=1)."""
    r, reg, nbuf = idam_forward_seq(x[None, None], context[None, None],
                                    prep, buffer[None], learning_rate)
    return r[0, 0], reg, nbuf[0]


def idam_reference_seq(xs, ctxs, params, buffer0, temperature=1.0, learning_rate=0.1):
    """Pure-JAX reference mirroring the PyTorch forward (training mode),
    applied step by step per head.  Matmuls use bf16 operands with f32
    accumulation (the TPU default for f32 matmuls), keeping the module's exact
    algebra: concat, cdist^2 + clamp, softmax, mean gate, separate write terms."""
    f32 = jnp.float32
    H, T, B, _ = xs.shape

    def mm(a, b):
        return jnp.dot(a.astype(jnp.bfloat16), b.astype(jnp.bfloat16),
                       preferred_element_type=f32)

    r_all, buf_all = [], []
    for h in range(H):
        wk, bk = params["wk"][h], params["bk"][h]
        wm, bm = params["wm"][h], params["bm"][h]
        p = params["prototypes"][h].astype(f32)
        p2 = jnp.sum(p * p, axis=-1)[None, :]
        buf = buffer0[h].astype(f32)
        r_h = []
        for t in range(T):
            c = jnp.concatenate([xs[h, t], ctxs[h, t]], axis=-1).astype(f32)
            k = mm(c, wk) + bk
            m = mm(c, wm) + bm
            k2 = jnp.sum(k * k, axis=-1, keepdims=True)
            dist = jnp.maximum(k2 + p2 - 2.0 * mm(k, p.T), 0.0)   # cdist^2, clamped
            attn = jax.nn.softmax(-dist / temperature, axis=-1)
            r_h.append(mm(attn, buf).astype(xs.dtype))
            ws = learning_rate * attn
            gate = jnp.mean(ws, axis=0)                           # (Nb,)
            wc = mm(ws.T, m) / B
            buf = jnp.maximum(1.0 - gate, 0.0)[:, None] * buf + wc
        r_all.append(jnp.stack(r_h))
        buf_all.append(buf)
    return jnp.stack(r_all), jnp.stack(buf_all)


def make_params(key, num_heads, input_dim, context_dim, key_dim, value_dim, num_bins):
    """Deterministic per-head parameter init (xavier-uniform weights, zero
    bias, randn prototypes with std 1/sqrt(key_dim), like the module)."""
    comb = input_dim + context_dim
    k1, k2, k3 = jax.random.split(key, 3)

    def xavier(k, fan_in, fan_out):
        limit = math.sqrt(6.0 / (fan_in + fan_out))
        return jax.random.uniform(k, (num_heads, fan_in, fan_out),
                                  jnp.float32, -limit, limit)

    return {
        "wk": xavier(k1, comb, key_dim),
        "bk": jnp.zeros((num_heads, 1, key_dim), jnp.float32),
        "wm": xavier(k2, comb, value_dim),
        "bm": jnp.zeros((num_heads, 1, value_dim), jnp.float32),
        "prototypes": jax.random.normal(k3, (num_heads, num_bins, key_dim),
                                        jnp.float32) * (1.0 / math.sqrt(key_dim)),
    }


if __name__ == "__main__":
    # Small but lane-dense demo: 2 heads x 8 recurrent steps, batch 8,
    # key/value/bin dims of 128 so outputs and MXU tiles are 128-lane dense.
    H, T, B = 2, 8, 8
    INPUT_DIM, CONTEXT_DIM = 16, 16
    KEY_DIM, VALUE_DIM, NUM_BINS = 128, 128, 128

    root = jax.random.PRNGKey(0)
    kx, kc, kparam, kb = jax.random.split(root, 4)

    xs = jax.random.normal(kx, (H, T, B, INPUT_DIM), jnp.float32)
    ctxs = jax.random.normal(kc, (H, T, B, CONTEXT_DIM), jnp.float32)
    params = make_params(kparam, H, INPUT_DIM, CONTEXT_DIM,
                         KEY_DIM, VALUE_DIM, NUM_BINS)
    # The module registers a zero buffer; use a non-zero persistent state (as
    # it would be after prior write steps) to exercise the read path.
    buffer0 = 0.1 * jax.random.normal(kb, (H, NUM_BINS, VALUE_DIM), jnp.float32)

    r_ref, nb_ref = idam_reference_seq(xs, ctxs, params, buffer0)
    r_ref = np.asarray(jax.block_until_ready(r_ref))
    nb_ref = np.asarray(jax.block_until_ready(nb_ref))

    prep = prepare_params(params)   # one-time prep, outside the per-step hot path
    retrieved, reg_loss, new_buffer = idam_forward_seq(xs, ctxs, prep, buffer0)
    jax.block_until_ready(retrieved)
    jax.block_until_ready(new_buffer)

    # Residual differences: f32 accumulation order, the approx EUP reciprocal
    # in the softmax, and rare bf16 rounding-boundary flips, accumulated over
    # the T-step recurrent buffer update.
    np.testing.assert_allclose(np.asarray(retrieved), r_ref, rtol=5e-4, atol=5e-4)
    np.testing.assert_allclose(np.asarray(new_buffer), nb_ref, rtol=5e-4, atol=5e-4)
    assert reg_loss is None

    print("KERNEL_OK")
</pallas_src>

<mosaic_0001>
module attributes {stable_mosaic.version = 11 : i64} {
  func.func @_idam_kernel(%arg0: i32, %arg1: i32, %arg2: memref<1x1x8x16xf32, #tpu.memory_space<vmem>>, %arg3: memref<1x1x8x16xf32, #tpu.memory_space<vmem>>, %arg4: memref<1x32x256xbf16, #tpu.memory_space<vmem>>, %arg5: memref<1x1x256xf32, #tpu.memory_space<vmem>>, %arg6: memref<1x128x128xbf16, #tpu.memory_space<vmem>>, %arg7: memref<1x1x128xf32, #tpu.memory_space<vmem>>, %arg8: memref<1x128x128xf32, #tpu.memory_space<vmem>>, %arg9: memref<1x1x8x128xf32, #tpu.memory_space<vmem>>, %arg10: memref<1x128x128xf32, #tpu.memory_space<vmem>>) attributes {dimension_semantics = [#tpu.dimension_semantics<parallel>, #tpu.dimension_semantics<arbitrary>], iteration_bounds = array<i64: 2, 8>, scalar_prefetch = 0 : i64, scratch_operands = 0 : i64, tpu.core_type = #tpu.core_type<tc>, window_params = [{transform_indices = @transform_0, window_bounds = array<i64: 1, 1, 8, 16>}, {transform_indices = @transform_1, window_bounds = array<i64: 1, 1, 8, 16>}, {transform_indices = @transform_2, window_bounds = array<i64: 1, 32, 256>}, {transform_indices = @transform_3, window_bounds = array<i64: 1, 1, 256>}, {transform_indices = @transform_4, window_bounds = array<i64: 1, 128, 128>}, {transform_indices = @transform_5, window_bounds = array<i64: 1, 1, 128>}, {transform_indices = @transform_6, window_bounds = array<i64: 1, 128, 128>}, {transform_indices = @transform_7, window_bounds = array<i64: 1, 1, 8, 128>}, {transform_indices = @transform_8, window_bounds = array<i64: 1, 128, 128>}]} {
    %c0_i32 = arith.constant 0 : i32
    %0 = arith.cmpi eq, %arg1, %c0_i32 : i32
    %1 = arith.extui %0 : i1 to i32
    %c0_i32_0 = arith.constant 0 : i32
    %2 = arith.cmpi ne, %1, %c0_i32_0 : i32
    scf.if %2 {
      %c0_44 = arith.constant 0 : index
      %c0_45 = arith.constant 0 : index
      %c0_46 = arith.constant 0 : index
      %66 = vector.load %arg8[%c0_44, %c0_45, %c0_46] : memref<1x128x128xf32, #tpu.memory_space<vmem>>, vector<1x128x128xf32>
      %67 = vector.shape_cast %66 : vector<1x128x128xf32> to vector<128x128xf32>
      %c0_47 = arith.constant 0 : index
      %c0_48 = arith.constant 0 : index
      %c0_49 = arith.constant 0 : index
      %68 = vector.load %arg10[%c0_47, %c0_48, %c0_49] : memref<1x128x128xf32, #tpu.memory_space<vmem>>, vector<1x128x128xf32>
      %69 = vector.shape_cast %68 : vector<1x128x128xf32> to vector<128x128xf32>
      %70 = vector.shape_cast %67 : vector<128x128xf32> to vector<1x128x128xf32>
      tpu.vector_store %arg10[%c0_47, %c0_48, %c0_49], %70 {strides = array<i32>} : memref<1x128x128xf32, #tpu.memory_space<vmem>>, vector<1x128x128xf32>,
    } else {
    }
    %c0 = arith.constant 0 : index
    %c0_1 = arith.constant 0 : index
    %c0_2 = arith.constant 0 : index
    %c0_3 = arith.constant 0 : index
    %3 = vector.load %arg2[%c0, %c0_1, %c0_2, %c0_3] : memref<1x1x8x16xf32, #tpu.memory_space<vmem>>, vector<1x1x8x16xf32>
    %4 = vector.shape_cast %3 : vector<1x1x8x16xf32> to vector<8x16xf32>
    %5 = arith.truncf %4 : vector<8x16xf32> to vector<8x16xbf16>
    %c0_4 = arith.constant 0 : index
    %c0_5 = arith.constant 0 : index
    %c0_6 = arith.constant 0 : index
    %c0_7 = arith.constant 0 : index
    %6 = vector.load %arg3[%c0_4, %c0_5, %c0_6, %c0_7] : memref<1x1x8x16xf32, #tpu.memory_space<vmem>>, vector<1x1x8x16xf32>
    %7 = vector.shape_cast %6 : vector<1x1x8x16xf32> to vector<8x16xf32>
    %8 = arith.truncf %7 : vector<8x16xf32> to vector<8x16xbf16>
    %c0_8 = arith.constant 0 : index
    %c0_9 = arith.constant 0 : index
    %c0_10 = arith.constant 0 : index
    %9 = vector.load %arg4[%c0_8, %c0_9, %c0_10] : memref<1x32x256xbf16, #tpu.memory_space<vmem>>, vector<1x16x256xbf16>
    %10 = vector.shape_cast %9 : vector<1x16x256xbf16> to vector<16x256xbf16>
    %cst = arith.constant dense<0.000000e+00> : vector<8x256xf32>
    %11 = tpu.matmul %5, %10, %cst {dimension_numbers = #tpu.dot_dimension_numbers<[1], [0], [0], [1], [0, 0, 1, 1], [], []>} : vector<8x16xbf16>, vector<16x256xbf16>, vector<8x256xf32> -> vector<8x256xf32>
    %c0_11 = arith.constant 0 : index
    %c16 = arith.constant 16 : index
    %c0_12 = arith.constant 0 : index
    %12 = vector.load %arg4[%c0_11, %c16, %c0_12] : memref<1x32x256xbf16, #tpu.memory_space<vmem>>, vector<1x16x256xbf16>
    %13 = vector.shape_cast %12 : vector<1x16x256xbf16> to vector<16x256xbf16>
    %cst_13 = arith.constant dense<0.000000e+00> : vector<8x256xf32>
    %14 = tpu.matmul %8, %13, %cst_13 {dimension_numbers = #tpu.dot_dimension_numbers<[1], [0], [0], [1], [0, 0, 1, 1], [], []>} : vector<8x16xbf16>, vector<16x256xbf16>, vector<8x256xf32> -> vector<8x256xf32>
    %15 = arith.addf %11, %14 : vector<8x256xf32>
    %c0_14 = arith.constant 0 : index
    %c0_15 = arith.constant 0 : index
    %c0_16 = arith.constant 0 : index
    %16 = vector.load %arg5[%c0_14, %c0_15, %c0_16] : memref<1x1x256xf32, #tpu.memory_space<vmem>>, vector<1x1x256xf32>
    %17 = vector.shape_cast %16 : vector<1x1x256xf32> to vector<1x256xf32>
    %18 = vector.broadcast %17 : vector<1x256xf32> to vector<8x256xf32>
    %19 = arith.addf %15, %18 : vector<8x256xf32>
    %20 = vector.extract_strided_slice %19 {offsets = [0, 0], sizes = [8, 128], strides = [1, 1]} : vector<8x256xf32> to vector<8x128xf32>
    %21 = vector.extract_strided_slice %19 {offsets = [0, 128], sizes = [8, 128], strides = [1, 1]} : vector<8x256xf32> to vector<8x128xf32>
    %c0_17 = arith.constant 0 : index
    %c0_18 = arith.constant 0 : index
    %c0_19 = arith.constant 0 : index
    %22 = vector.load %arg6[%c0_17, %c0_18, %c0_19] : memref<1x128x128xbf16, #tpu.memory_space<vmem>>, vector<1x128x128xbf16>
    %23 = vector.shape_cast %22 : vector<1x128x128xbf16> to vector<128x128xbf16>
    %24 = arith.truncf %20 : vector<8x128xf32> to vector<8x128xbf16>
    %cst_20 = arith.constant dense<0.000000e+00> : vector<8x128xf32>
    %25 = tpu.matmul %24, %23, %cst_20 {dimension_numbers = #tpu.dot_dimension_numbers<[1], [0], [0], [1], [0, 0, 1, 1], [], []>} : vector<8x128xbf16>, vector<128x128xbf16>, vector<8x128xf32> -> vector<8x128xf32>
    %c0_21 = arith.constant 0 : index
    %c0_22 = arith.constant 0 : index
    %c0_23 = arith.constant 0 : index
    %26 = vector.load %arg7[%c0_21, %c0_22, %c0_23] : memref<1x1x128xf32, #tpu.memory_space<vmem>>, vector<1x1x128xf32>
    %27 = vector.shape_cast %26 : vector<1x1x128xf32> to vector<1x128xf32>
    %28 = vector.broadcast %27 : vector<1x128xf32> to vector<8x128xf32>
    %29 = arith.subf %25, %28 : vector<8x128xf32>
    %cst_24 = arith.constant dense<0xFF800000> : vector<8xf32>
    %30 = vector.multi_reduction <maximumf>, %29, %cst_24 [1] : vector<8x128xf32> to vector<8xf32>
    %31 = vector.shape_cast %30 : vector<8xf32> to vector<8x1xf32>
    %32 = vector.broadcast %31 : vector<8x1xf32> to vector<8x128xf32>
    %33 = arith.subf %29, %32 : vector<8x128xf32>
    %34 = math.exp %33 : vector<8x128xf32>
    %cst_25 = arith.constant dense<0.000000e+00> : vector<8xf32>
    %35 = vector.multi_reduction <add>, %34, %cst_25 [1] : vector<8x128xf32> to vector<8xf32>
    %36 = vector.shape_cast %35 : vector<8xf32> to vector<8x1xf32>
    %37 = tpu.reciprocal %36 {approx = true} : vector<8x1xf32> -> vector<8x1xf32>
    %38 = vector.broadcast %37 : vector<8x1xf32> to vector<8x128xf32>
    %39 = arith.mulf %34, %38 : vector<8x128xf32>
    %c0_26 = arith.constant 0 : index
    %c0_27 = arith.constant 0 : index
    %c0_28 = arith.constant 0 : index
    %40 = vector.load %arg10[%c0_26, %c0_27, %c0_28] : memref<1x128x128xf32, #tpu.memory_space<vmem>>, vector<1x128x128xf32>
    %41 = vector.shape_cast %40 : vector<1x128x128xf32> to vector<128x128xf32>
    %42 = arith.truncf %39 : vector<8x128xf32> to vector<8x128xbf16>
    %43 = arith.truncf %41 : vector<128x128xf32> to vector<128x128xbf16>
    %cst_29 = arith.constant dense<0.000000e+00> : vector<8x128xf32>
    %44 = tpu.matmul %42, %43, %cst_29 {dimension_numbers = #tpu.dot_dimension_numbers<[1], [0], [0], [1], [0, 0, 1, 1], [], []>} : vector<8x128xbf16>, vector<128x128xbf16>, vector<8x128xf32> -> vector<8x128xf32>
    %c0_30 = arith.constant 0 : index
    %c0_31 = arith.constant 0 : index
    %c0_32 = arith.constant 0 : index
    %c0_33 = arith.constant 0 : index
    %45 = vector.load %arg9[%c0_30, %c0_31, %c0_32, %c0_33] : memref<1x1x8x128xf32, #tpu.memory_space<vmem>>, vector<1x1x8x128xf32>
    %46 = vector.shape_cast %45 : vector<1x1x8x128xf32> to vector<8x128xf32>
    %47 = vector.shape_cast %44 : vector<8x128xf32> to vector<1x1x8x128xf32>
    tpu.vector_store %arg9[%c0_30, %c0_31, %c0_32, %c0_33], %47 {strides = array<i32>} : memref<1x1x8x128xf32, #tpu.memory_space<vmem>>, vector<1x1x8x128xf32>,
    %cst_34 = arith.constant 1.000000e+00 : bf16
    %48 = vector.broadcast %cst_34 : bf16 to vector<8x1xbf16>
    %cst_35 = arith.constant dense<0.000000e+00> : vector<128x1xf32>
    %49 = tpu.matmul %42, %48, %cst_35 {dimension_numbers = #tpu.dot_dimension_numbers<[0], [0], [1], [1], [0, 1, 1, 1], [], []>} : vector<8x128xbf16>, vector<8x1xbf16>, vector<128x1xf32> -> vector<128x1xf32>
    %cst_36 = arith.constant 1.250000e-02 : f32
    %50 = vector.broadcast %cst_36 : f32 to vector<128x1xf32>
    %51 = arith.mulf %49, %50 : vector<128x1xf32>
    %52 = arith.truncf %21 : vector<8x128xf32> to vector<8x128xbf16>
    %cst_37 = arith.constant dense<0.000000e+00> : vector<128x128xf32>
    %53 = tpu.matmul %42, %52, %cst_37 {dimension_numbers = #tpu.dot_dimension_numbers<[0], [0], [1], [1], [0, 1, 1, 1], [], []>} : vector<8x128xbf16>, vector<8x128xbf16>, vector<128x128xf32> -> vector<128x128xf32>
    %cst_38 = arith.constant 1.250000e-02 : f32
    %54 = vector.broadcast %cst_38 : f32 to vector<128x128xf32>
    %55 = arith.mulf %53, %54 : vector<128x128xf32>
    %cst_39 = arith.constant 1.000000e+00 : f32
    %56 = vector.broadcast %cst_39 : f32 to vector<128x1xf32>
    %57 = arith.subf %56, %51 : vector<128x1xf32>
    %cst_40 = arith.constant 0.000000e+00 : f32
    %58 = vector.broadcast %cst_40 : f32 to vector<128x1xf32>
    %59 = arith.maximumf %57, %58 : vector<128x1xf32>
    %60 = vector.broadcast %59 : vector<128x1xf32> to vector<128x128xf32>
    %61 = arith.mulf %60, %41 : vector<128x128xf32>
    %62 = arith.addf %61, %55 : vector<128x128xf32>
    %c0_41 = arith.constant 0 : index
    %c0_42 = arith.constant 0 : index
    %c0_43 = arith.constant 0 : index
    %63 = vector.load %arg10[%c0_41, %c0_42, %c0_43] : memref<1x128x128xf32, #tpu.memory_space<vmem>>, vector<1x128x128xf32>
    %64 = vector.shape_cast %63 : vector<1x128x128xf32> to vector<128x128xf32>
    %65 = vector.shape_cast %62 : vector<128x128xf32> to vector<1x128x128xf32>
    tpu.vector_store %arg10[%c0_41, %c0_42, %c0_43], %65 {strides = array<i32>} : memref<1x128x128xf32, #tpu.memory_space<vmem>>, vector<1x128x128xf32>,
    return
  }
  func.func @transform_0(%arg0: i32, %arg1: i32) -> (i32, i32, i32, i32) {
    %c0_i32 = arith.constant 0 : i32
    %c0_i32_0 = arith.constant 0 : i32
    %c0_i32_1 = arith.constant 0 : i32
    return %arg0, %arg1, %c0_i32, %c0_i32_0 : i32, i32, i32, i32
  }
  func.func @transform_1(%arg0: i32, %arg1: i32) -> (i32, i32, i32, i32) {
    %c0_i32 = arith.constant 0 : i32
    %c0_i32_0 = arith.constant 0 : i32
    %c0_i32_1 = arith.constant 0 : i32
    return %arg0, %arg1, %c0_i32, %c0_i32_0 : i32, i32, i32, i32
  }
  func.func @transform_2(%arg0: i32, %arg1: i32) -> (i32, i32, i32) {
    %c0_i32 = arith.constant 0 : i32
    %c0_i32_0 = arith.constant 0 : i32
    %c0_i32_1 = arith.constant 0 : i32
    return %arg0, %c0_i32, %c0_i32_0 : i32, i32, i32
  }
  func.func @transform_3(%arg0: i32, %arg1: i32) -> (i32, i32, i32) {
    %c0_i32 = arith.constant 0 : i32
    %c0_i32_0 = arith.constant 0 : i32
    %c0_i32_1 = arith.constant 0 : i32
    return %arg0, %c0_i32, %c0_i32_0 : i32, i32, i32
  }
  func.func @transform_4(%arg0: i32, %arg1: i32) -> (i32, i32, i32) {
    %c0_i32 = arith.constant 0 : i32
    %c0_i32_0 = arith.constant 0 : i32
    %c0_i32_1 = arith.constant 0 : i32
    return %arg0, %c0_i32, %c0_i32_0 : i32, i32, i32
  }
  func.func @transform_5(%arg0: i32, %arg1: i32) -> (i32, i32, i32) {
    %c0_i32 = arith.constant 0 : i32
    %c0_i32_0 = arith.constant 0 : i32
    %c0_i32_1 = arith.constant 0 : i32
    return %arg0, %c0_i32, %c0_i32_0 : i32, i32, i32
  }
  func.func @transform_6(%arg0: i32, %arg1: i32) -> (i32, i32, i32) {
    %c0_i32 = arith.constant 0 : i32
    %c0_i32_0 = arith.constant 0 : i32
    %c0_i32_1 = arith.constant 0 : i32
    return %arg0, %c0_i32, %c0_i32_0 : i32, i32, i32
  }
  func.func @transform_7(%arg0: i32, %arg1: i32) -> (i32, i32, i32, i32) {
    %c0_i32 = arith.constant 0 : i32
    %c0_i32_0 = arith.constant 0 : i32
    %c0_i32_1 = arith.constant 0 : i32
    return %arg0, %arg1, %c0_i32, %c0_i32_0 : i32, i32, i32, i32
  }
  func.func @transform_8(%arg0: i32, %arg1: i32) -> (i32, i32, i32) {
    %c0_i32 = arith.constant 0 : i32
    %c0_i32_0 = arith.constant 0 : i32
    %c0_i32_1 = arith.constant 0 : i32
    return %arg0, %c0_i32, %c0_i32_0 : i32, i32, i32
  }
}

</mosaic_0001>

<bundles_post_ra>
// kernel: tpu_custom_call.1
= control target key start
LH: loop header
LB: loop body
LE: loop exit
PB: predicated region body
PF: predicated region fallthrough
CT: control target
= control target key end

     0   :  { %s3081_s0 = inlined_call_operand.hbm [shape: f32[2,8,8,16], index: 0, kind: input, shape index: {}]   ;;  %s3082_s1 = inlined_call_operand.hbm [shape: f32[2,8,8,16], index: 1, kind: input, shape index: {}]   ;;  %s3083_s2 = inlined_call_operand.hbm [shape: bf16[2,32,256], index: 2, kind: input, shape index: {}]   ;;  %s3084_s3 = inlined_call_operand.vmem [shape: f32[2,1,256], index: 3, kind: input, shape index: {}]   ;;  %s3085_s4 = inlined_call_operand.hbm [shape: bf16[2,128,128], index: 4, kind: input, shape index: {}]   ;;  %s3086_s5 = inlined_call_operand.vmem [shape: f32[2,1,128], index: 5, kind: input, shape index: {}]   ;;  %s3087_s6 = inlined_call_operand.hbm [shape: f32[2,128,128], index: 6, kind: input, shape index: {}]   ;;  %s3088_s7 = inlined_call_operand.hbm [shape: f32[2,8,8,128], index: 7, kind: output, shape index: {0}]   ;;  %s3089_s8 = inlined_call_operand.hbm [shape: f32[2,128,128], index: 8, kind: output, shape index: {1}]  }
   0x1   :  { %3126 = sst [smem:[#allocation37_spill]] %s3082_s1 }
   0x2   :  { %3127 = sst [smem:[#allocation38_spill]] %s3084_s3 }
   0x3   :  { %3128 = sst [smem:[#allocation39_spill]] %s3085_s4 }
   0x4   :  { %3129 = sst [smem:[#allocation40_spill]] %s3086_s5 }
   0x5   :  { %3130 = sst [smem:[#allocation41_spill]] %s3088_s7 }
   0x6   :  { %3131 = sst [smem:[#allocation42_spill]] %s3089_s8 }
   0x7   :  { %14 = vsyncpa [#allocation3], 0 }
   0x8   :  { %16 = vsyncpa [#allocation3 + $0x1], 0 }
   0x9   :  { %17 = vsyncpa [#allocation6], 0 }
   0xa   :  { %19 = vsyncpa [#allocation6 + $0x1], 0 }
   0xb   :  { %20 = vsyncpa [#allocation9], 0 }
   0xc   :  { %22 = vsyncpa [#allocation9 + $0x1], 0 }
   0xd   :  { %23 = vsyncpa [#allocation4], 0 }
   0xe   :  { %25 = vsyncpa [#allocation4 + $0x1], 0 }
   0xf   :  { %26 = vsyncpa [#allocation13], 0 }
  0x10   :  { %28 = vsyncpa [#allocation13 + $0x1], 0  ;;  %s2314_s27 = smov 0   ;;  %s2316_s28 = smov 0  }
  0x11   :  { %s2318_s29 = smov 0   ;;  %s2320_s30 = smov 0  }
  0x12   :  { %s2322_s9 = smov 0   ;;  %s2324_s10 = smov 0  }
  0x13   :  { %s2326_s11 = smov 0   ;;  %s2328_s12 = smov 0  }
  0x14   :  { %s2330_s13 = smov 0   ;;  %s2332_s14 = smov 0  }
  0x15   :  { %s2334_s15 = smov 0  }
  0x16 LB: > { %3132 = sst [smem:[#allocation20_spill]] %s2210_s27  ;;  %s2370_s16 = sadd.s32 4294967295, %s2250_s15   ;;  %s2250_s15 = sphi %s2334_s15, %s34_s15   ;;  %s2246_s14 = sphi %s2332_s14, %s3208_s14   ;;  %s2242_s13 = sphi %s2330_s13, %s3202_s13   ;;  %s2238_s12 = sphi %s2328_s12, %s3207_s12   ;;  %s2234_s11 = sphi %s2326_s11, %s3201_s11   ;;  %s2230_s10 = sphi %s2324_s10, %s3206_s10   ;;  %s2226_s9 = sphi %s2322_s9, %s3205_s9   ;;  %s2222_s30 = sphi %s2320_s30, %s3204_s30   ;;  %s2218_s29 = sphi %s2318_s29, %s3199_s29   ;;  %s2214_s28 = sphi %s2316_s28, %s3198_s28   ;;  %s2210_s27 = sphi %s2314_s27, %s3197_s27  }
  0x17   : > { %3133 = sst [smem:[#allocation21_spill]] %s2214_s28  ;;  %s1592_s17 = sadd.s32 4294967294, %s2250_s15  }
  0x18   : > { %3134 = sst [smem:[#allocation22_spill]] %s2218_s29  ;;  %s43_s18 = sadd.s32 1, %s2242_s13 }
  0x19   : > { %3135 = sst [smem:[#allocation23_spill]] %s2222_s30  ;;  %s46_s19 = sadd.s32 1, %s2246_s14 }
  0x1a   : > { %3136 = sst [smem:[#allocation24_spill]] %s2234_s11  ;;  %p44_p0 = scmp.ge.s32.totalorder %s43_s18, 8 }
  0x1b   : > { %3137 = sst [smem:[#allocation25_spill]] %s2238_s12  ;;  %s55_s20 = sadd.s32 1, %s2230_s10 }
  0x1c   : > { %3138 = sst [smem:[#allocation26_spill]] %s2242_s13  ;;  %p62_p1 = scmp.ne.s32.totalorder %s2230_s10, %s2226_s9 }
  0x1d   : > { %3139 = sst [smem:[#allocation27_spill]] %s2250_s15  ;;  %p63_p2 = scmp.eq.s32.totalorder %s2250_s15, 0 }
  0x1e   : > { %s3210_s18 = smov (%p44_p0, %s43_s18), 0  ;;  %s3212_s19 = smov (!%p44_p0, %s46_s19), %s2246_s14 }
  0x1f   : > { %3140 = sst [smem:[#allocation28_spill]] %s3210_s18  ;;  %s51_s21 = ssub.s32 %s2242_s13, %s3210_s18 }
  0x20   : > { %p2389_p3 = por %p63_p2, %p62_p1  ;;  %p48_p4 = scmp.ge.s32.totalorder %s3212_s19, 2 }
  0x21   : > { %p3093_p5 = scmp.ne.s32.totalorder %s2226_s9, %s2222_s30  ;;  %p69_p6 = scmp.eq.s32.totalorder %s2370_s16, 0 }
  0x22   : > { %s109_s23 = sadd.s32 1, %s2218_s29  ;;  %s3214_s19 = smov (%p48_p4, %s3212_s19), 0 }
  0x23   : > { %3142 = sst [smem:[#allocation29_spill]] %s3214_s19  ;;  %p2404_p7 = por %p69_p6, %p3093_p5 }
  0x24   : > { %p116_p8 = scmp.ne.s32.totalorder %s2218_s29, %s2214_s28  ;;  %s50_s25 = ssub.s32 %s2246_s14, %s3214_s19 }
  0x25   : > { %s3143_s24 = scalar_select %p2404_p7, 1, 0 }
  0x26   : > { %p122_p9 = scmp.ne.s32.totalorder %s2214_s28, %s2210_s27  ;;  %s52_s26 = sor.u32 %s51_s21, %s50_s25 }
  0x27   : > { %p107_p10 = scmp.eq.s32.totalorder %s50_s25, 0  ;;  %p53_p11 = scmp.eq.s32.totalorder %s52_s26, 0 }
  0x28   : > { %p2419_p12 = por %p116_p8, %p63_p2  ;;  %p2434_p13 = por %p122_p9, %p69_p6 }
  0x29   : > { %s2424_s8 = scalar_select %p107_p10, %s2218_s29, %s109_s23  }
  0x2a   : > { %s2427_s7 = scalar_select %p53_p11, %s2230_s10, %s55_s20  }
  0x2b   : > { %3145 = sst [smem:[#allocation30_spill]] %s2424_s8  ;;  %p252_p0 = scmp.eq.s32.totalorder %s2370_s16, 15 }
  0x2c   : > { %3146 = sst [smem:[#allocation31_spill]] %s2427_s7  ;;  %p258_p4 = scmp.eq.s32.totalorder %s1592_s17, 15 }
  0x2d   : > { %s3147_s21 = scalar_select %p2434_p13, 1, 0 }
  0x2e   : > { %p2442_p5 = por %p252_p0, %p62_p1  ;;  %p2449_p2 = por %p252_p0, %p116_p8 }
  0x2f   : > { %3148 = sst [smem:[#allocation32_spill]] %s3147_s21  ;;  %p3153_p10 = scmp.ne.s32.totalorder %s2226_s9, %s2222_s30 }
  0x30   : > { %s3149_s25 = scalar_select %p2442_p5, 1, 0 }
  0x31   : > { %s3151_s23 = scalar_select %p2449_p2, 1, 0 }
  0x32   : > { %3150 = sst [smem:[#allocation33_spill]] %s3149_s25  ;;  %p2456_p11 = por %p258_p4, %p3153_p10 }
  0x33   : > { %3152 = sst [smem:[#allocation34_spill]] %s3151_s23  ;;  %p2463_p6 = por %p258_p4, %p122_p9 }
  0x34   : > { %s3154_s20 = scalar_select %p2456_p11, 1, 0 }
  0x35   : > { %s3156_s17 = scalar_select %p2463_p6, 1, 0 }
  0x36   : > { %3155 = sst [smem:[#allocation35_spill]] %s3154_s20  ;;  %p1814_p1 = scmp.lt.s32.totalorder %s2250_s15, 16 }
  0x37   : > { %3157 = sst [smem:[#allocation36_spill]] %s3156_s17  ;;  %s3101_s26 = sand.u32 1, %s2230_s10  }
  0x38   : > { %s2471_s19 = sshll.u32 %s3101_s26, 3  ;;  %s1596_s7 = sshll.u32 %s2246_s14, 3 }
  0x39   : > { %s2475_s8 = sadd.s32 %s2242_s13, %s1596_s7  ;;  %p2479_p8 = pnand %p1814_p1, %p2389_p3 }
  0x3a   : > { %s3105_s27 = sshll.u32 %s2475_s8, 7  ;;  %s3108_s17 = sand.u32 1, %s2250_s15  }
  0x3b   : > { %s3158_s30 = scalar_select %p2479_p8, 1, 0 }
  0x3c   : > { %s3159_s1 = sld [smem:[#allocation37_spill]]  ;;  %s328_s7 = scalar_lea.vmem [#allocation5], %s2471_s19 }
  0x3d   : > { %s337_s22 = sshll.u32 %s328_s7, 4  ;;  %p2495_p3 = pnand %p1814_p1, %p2419_p12  ;;  %s2499_s22 = int_to_ptr.vmem [resolvable:$true] %s337_s22 }
  0x3e   : > { %s2503_s25 = scalar_lea.sflag [#allocation6], %s3108_s17  ;;  %p3112_p0 = pneg %p2479_p8 }
  0x3f   : > { %s3160_s13 = scalar_select %p2495_p3, 1, 0 }
  0x42   : > { %s2490_s26 = scalar_lea.hbm %s3159_s1, %s3105_s27  ;;  %s1939_s18 = scalar_lea.hbm %s3159_s1, 2048 }
  0x43   : > { %s1934_s11 = scalar_lea.hbm %s2490_s26, 128  ;;  %p1940_p12 = scmp.lt.u32.totalorder %s2490_s26, %s3159_s1 }
  0x44   : > { %p1935_p9 = scmp.ne.s32.totalorder %s2490_s26, %s1934_s11  ;;  %p1941_p1 = scmp.lt.u32.totalorder %s1939_s18, %s1934_s11 }
  0x45   : > { %p1943_p11 = scmp.lt.u32.totalorder %s1934_s11, %s2490_s26 }
  0x46   : > { %p1937_p4 = pnand %p3112_p0, %p1935_p9  ;;  %p1942_p6 = por %p1941_p1, %p1940_p12 }
  0x48   : > { %p1938_p10 = pneg %p1937_p4  ;;  %p1944_p2 = por %p1943_p11, %p1942_p6 }
  0x4a   : > { %p1945_p5 = pnand %p1944_p2, %p1938_p10 }
  0x4c   : > { %1948 = shalt.err (!%p1945_p5)
}
  0x4d   : > { %s1949_s17 = scalar_lea.vmem %s2499_s22, 128  ;;  %s2252_s23 = smov [#allocation5]  }
  0x4e   : > { %p1950_p9 = scmp.ne.s32.totalorder %s2499_s22, %s1949_s17  ;;  %s1954_s20 = sshll.u32 %s2252_s23, 4  ;;  %s1955_s20 = int_to_ptr.vmem [resolvable:$false] %s1954_s20 }
  0x4f   : > { %s1956_s27 = scalar_lea.vmem %s1955_s20, 256  ;;  %p1957_p7 = scmp.lt.s32.totalorder %s2499_s22, %s1955_s20 }
  0x50   : > { %p1952_p4 = pnand %p1950_p9, %p3112_p0  ;;  %p1958_p12 = scmp.lt.s32.totalorder %s1956_s27, %s1949_s17 }
  0x52   : > { %p1953_p13 = pneg %p1952_p4  ;;  %p1959_p1 = por %p1958_p12, %p1957_p7 }
  0x54   : > { %p1960_p11 = pnand %p1959_p1, %p1953_p13 }
  0x56   : > { %1963 = shalt.err (!%p1960_p11)
}
  0x57   : > { %1797 = dma.hbm_to_vmem [thread:$0]  (!%p2479_p8), %s2490_s26, 128, %s2499_s22, %s2503_s25  }
  0x58   : > { %p1610_p5 = scmp.ge.s32.totalorder %s2250_s15, 1  ;;  %p418_p2 = scmp.lt.s32.totalorder %s2250_s15, 17 }
  0x59   : > { %s2534_s11 = sand.u32 1, %s2218_s29   ;;  %s1660_s18 = sshll.u32 %s2246_s14, 10 }
  0x5a   : > { %s1604_s17 = sshll.u32 %s2534_s11, 6  ;;  %p2538_p7 = pnand %p1610_p5, %p418_p2 }
  0x5b   : > { %s3162_s4 = sld [smem:[#allocation39_spill]]  ;;  %s376_s26 = scalar_lea.vmem [#allocation8], %s1604_s17 }
  0x5c   : > { %s3161_s7 = scalar_select %p2538_p7, 1, 0 }
  0x5d   : > { %s383_s22 = sshll.u32 %s376_s26, 4  ;;  %s3163_s1 = sand.u32 1, %s2250_s15   ;;  %s2547_s22 = int_to_ptr.vmem [resolvable:$true] %s383_s22 }
  0x5e   : > { %s2551_s29 = scalar_lea.sflag [#allocation9], %s3163_s1  ;;  %p2557_p6 = pneg %p2495_p3 }
  0x60   : > { %s3164_s5 = scalar_select %p2557_p6, 1, 0 }
  0x61   : > { %s2545_s27 = scalar_lea.hbm %s3162_s4, %s1660_s18  ;;  %s1969_s17 = scalar_lea.hbm %s3162_s4, 2048 }
  0x62   : > { %s1964_s3 = scalar_lea.hbm %s2545_s27, 1024  ;;  %p1970_p4 = scmp.lt.u32.totalorder %s2545_s27, %s3162_s4 }
  0x63   : > { %p1965_p13 = scmp.ne.s32.totalorder %s2545_s27, %s1964_s3  ;;  %p1971_p12 = scmp.lt.u32.totalorder %s1969_s17, %s1964_s3 }
  0x64   : > { %p1973_p11 = scmp.lt.u32.totalorder %s1964_s3, %s2545_s27 }
  0x65   : > { %p1967_p10 = pnand %p2557_p6, %p1965_p13  ;;  %p1972_p1 = por %p1971_p12, %p1970_p4 }
  0x67   : > { %p1968_p9 = pneg %p1967_p10  ;;  %p1974_p5 = por %p1973_p11, %p1972_p1 }
  0x69   : > { %p1975_p2 = pnand %p1974_p5, %p1968_p9 }
  0x6b   : > { %1978 = shalt.err (!%p1975_p2)
}
  0x6c   : > { %s1979_s1 = scalar_lea.vmem %s2547_s22, 1024  ;;  %s2253_s18 = smov [#allocation8]  }
  0x6d   : > { %p1980_p13 = scmp.ne.s32.totalorder %s2547_s22, %s1979_s1  ;;  %s1984_s23 = sshll.u32 %s2253_s18, 4  ;;  %s1985_s23 = int_to_ptr.vmem [resolvable:$false] %s1984_s23 }
  0x6e   : > { %s1986_s20 = scalar_lea.vmem %s1985_s23, 2048  ;;  %p1987_p7 = scmp.lt.s32.totalorder %s2547_s22, %s1985_s23 }
  0x6f   : > { %p1982_p10 = pnand %p1980_p13, %p2557_p6  ;;  %p1988_p8 = scmp.lt.s32.totalorder %s1986_s20, %s1979_s1 }
  0x71   : > { %p1983_p0 = pneg %p1982_p10  ;;  %p1989_p4 = por %p1988_p8, %p1987_p7 }
  0x73   : > { %p1990_p12 = pnand %p1989_p4, %p1983_p0 }
  0x75   : > { %1993 = shalt.err (!%p1990_p12)
}
  0x76   : > { %s2254_s3 = smov 64   ;;  %s2255_s17 = smov 4  }
  0x77   : > { %1803 = dma.hbm_to_vmem [thread:$0]  (!%p2495_p3), %s2545_s27, 1024, %s2547_s22, %s2551_s29, %s2254_s3, %s2254_s3, %s2255_s17  }
  0x78   : > { %s3165_s26 = sshll.u32 %s2475_s8, 7  ;;  %s308_s20 = scalar_lea.vmem [#allocation2], %s2471_s19 }
  0x79   : > { %s2586_s1 = scalar_lea.hbm %s3081_s0, %s3165_s26  ;;  %s317_s4 = sshll.u32 %s308_s20, 4  ;;  %s318_s4 = int_to_ptr.vmem [resolvable:$true] %s317_s4 }
  0x7a   : > { %s1601_s15 = sshll.u32 %s2534_s11, 5  ;;  %s3166_s12 = sand.u32 1, %s2230_s10  }
  0x7b   : > { %s305_s21 = scalar_lea.sflag [#allocation3], %s3166_s12  ;;  %s1994_s28 = scalar_lea.hbm %s2586_s1, 128 }
  0x7c   : > { %p1995_p8 = scmp.ne.s32.totalorder %s2586_s1, %s1994_s28  ;;  %p3167_p0 = scmp.ne.s32.totalorder %s3158_s30, 0 }
  0x7d   : > { %s1999_s22 = scalar_lea.hbm %s3081_s0, 2048  ;;  %p2000_p11 = scmp.lt.u32.totalorder %s2586_s1, %s3081_s0 }
  0x7e   : > { %p3168_p7 = pneg %p3167_p0  ;;  %p2001_p5 = scmp.lt.u32.totalorder %s1999_s22, %s1994_s28 }
  0x7f   : > { %p2003_p13 = scmp.lt.u32.totalorder %s1994_s28, %s2586_s1 }
  0x80   : > { %p1997_p9 = pnand %p1995_p8, %p3168_p7  ;;  %p2002_p2 = por %p2001_p5, %p2000_p11 }
  0x82   : > { %p1998_p1 = pneg %p1997_p9  ;;  %p2004_p10 = por %p2003_p13, %p2002_p2 }
  0x84   : > { %p2005_p4 = pnand %p2004_p10, %p1998_p1 }
  0x86   : > { %2008 = shalt.err (!%p2005_p4)
}
  0x87   : > { %s2009_s12 = scalar_lea.vmem %s318_s4, 128  ;;  %p3169_p8 = pmov %p3168_p7 }
  0x88   : > { %p2010_p12 = scmp.ne.s32.totalorder %s318_s4, %s2009_s12  ;;  %s2256_s19 = smov [#allocation2]  }
  0x89   : > { %s2014_s26 = sshll.u32 %s2256_s19, 4  ;;  %s2015_s26 = int_to_ptr.vmem [resolvable:$false] %s2014_s26 }
  0x8a   : > { %p2012_p7 = pnand %p2010_p12, %p3169_p8  ;;  %s2016_s18 = scalar_lea.vmem %s2015_s26, 256 }
  0x8b   : > { %p2017_p3 = scmp.lt.s32.totalorder %s318_s4, %s2015_s26  ;;  %p2018_p6 = scmp.lt.s32.totalorder %s2016_s18, %s2009_s12 }
  0x8c   : > { %p2013_p9 = pneg %p2012_p7 }
  0x8d   : > { %p2019_p5 = por %p2018_p6, %p2017_p3 }
  0x8f   : > { %p2020_p11 = pnand %p2019_p5, %p2013_p9 }
  0x91   : > { %2023 = shalt.err (!%p2020_p11)
}
  0x92   : > { %1794 = dma.hbm_to_vmem [thread:$0]  (!%p3167_p0), %s2586_s1, 128, %s318_s4, %s305_s21  }
  0x93   : > { %s1659_s28 = sshll.u32 %s2246_s14, 9  ;;  %s348_s23 = scalar_lea.vmem [#allocation7], %s1601_s15 }
  0x94   : > { %s355_s20 = sshll.u32 %s348_s23, 4  ;;  %s2617_s22 = scalar_lea.hbm %s3083_s2, %s1659_s28  ;;  %s2619_s20 = int_to_ptr.vmem [resolvable:$true] %s355_s20 }
  0x95   : > { %s2024_s30 = scalar_lea.hbm %s2617_s22, 512  ;;  %p3170_p6 = scmp.ne.s32.totalorder %s3164_s5, 0 }
  0x96   : > { %p2025_p3 = scmp.ne.s32.totalorder %s2617_s22, %s2024_s30  ;;  %s2029_s15 = scalar_lea.hbm %s3083_s2, 1024 }
  0x97   : > { %p2030_p2 = scmp.lt.u32.totalorder %s2617_s22, %s3083_s2  ;;  %p2031_p13 = scmp.lt.u32.totalorder %s2029_s15, %s2024_s30 }
  0x98   : > { %p2027_p1 = pnand %p2025_p3, %p3170_p6  ;;  %p2033_p4 = scmp.lt.u32.totalorder %s2024_s30, %s2617_s22 }
  0x99   : > { %p2032_p10 = por %p2031_p13, %p2030_p2 }
  0x9a   : > { %p2028_p0 = pneg %p2027_p1 }
  0x9b   : > { %p2034_p12 = por %p2033_p4, %p2032_p10 }
  0x9d   : > { %p2035_p8 = pnand %p2034_p12, %p2028_p0 }
  0x9f   : > { %2038 = shalt.err (!%p2035_p8)
}
  0xa0   : > { %s2039_s17 = scalar_lea.vmem %s2619_s20, 512  ;;  %s2257_s12 = smov [#allocation7]  }
  0xa1   : > { %p2040_p7 = scmp.ne.s32.totalorder %s2619_s20, %s2039_s17  ;;  %s2044_s19 = sshll.u32 %s2257_s12, 4  ;;  %s2045_s19 = int_to_ptr.vmem [resolvable:$false] %s2044_s19 }
  0xa2   : > { %s2046_s26 = scalar_lea.vmem %s2045_s19, 1024  ;;  %p2047_p11 = scmp.lt.s32.totalorder %s2619_s20, %s2045_s19 }
  0xa3   : > { %p2042_p9 = pnand %p2040_p7, %p3170_p6  ;;  %p2048_p3 = scmp.lt.s32.totalorder %s2046_s26, %s2039_s17 }
  0xa5   : > { %p2043_p5 = pneg %p2042_p9  ;;  %p2049_p1 = por %p2048_p3, %p2047_p11 }
  0xa7   : > { %p2050_p2 = pnand %p2049_p1, %p2043_p5 }
  0xa9   : > { %2053 = shalt.err (!%p2050_p2)
}
  0xaa   : > { %s2258_s18 = smov 128   ;;  %s2259_s28 = smov 8  }
  0xab   : > { %p3171_p0 = scmp.ne.s32.totalorder %s3160_s13, 0  ;;  %s1607_s23 = sshll.u32 %s2534_s11, 7 }
  0xac   : > { %s1661_s8 = sshll.u32 %s2246_s14, 11  ;;  %s403_s21 = scalar_lea.vmem [#allocation10], %s1607_s23 }
  0xad   : > { %1800 = dma.hbm_to_vmem [thread:$0]  (!%p3171_p0), %s2617_s22, 512, %s2619_s20, %s2503_s25, %s2258_s18, %s2258_s18, %s2259_s28  }
  0xae   : > { %s2651_s4 = scalar_lea.hbm %s3087_s6, %s1661_s8  ;;  %s410_s15 = sshll.u32 %s403_s21, 4  ;;  %s2653_s15 = int_to_ptr.vmem [resolvable:$true] %s410_s15 }
  0xaf   : > { %s2054_s1 = scalar_lea.hbm %s2651_s4, 2048  ;;  %s2059_s20 = scalar_lea.hbm %s3087_s6, 4096 }
  0xb0   : > { %p2055_p13 = scmp.ne.s32.totalorder %s2651_s4, %s2054_s1  ;;  %p2060_p12 = scmp.lt.u32.totalorder %s2651_s4, %s3087_s6 }
  0xb1   : > { %p2061_p8 = scmp.lt.u32.totalorder %s2059_s20, %s2054_s1  ;;  %p2063_p9 = scmp.lt.u32.totalorder %s2054_s1, %s2651_s4 }
  0xb2   : > { %p2057_p10 = pnand %p2055_p13, %p3170_p6 }
  0xb3   : > { %p2062_p7 = por %p2061_p8, %p2060_p12 }
  0xb4   : > { %p2058_p4 = pneg %p2057_p10 }
  0xb5   : > { %p2064_p5 = por %p2063_p9, %p2062_p7 }
  0xb7   : > { %p2065_p11 = pnand %p2064_p5, %p2058_p4 }
  0xb9   : > { %2068 = shalt.err (!%p2065_p11)
}
  0xba   : > { %s2069_s17 = scalar_lea.vmem %s2653_s15, 2048  ;;  %s2260_s12 = smov [#allocation10]  }
  0xbb   : > { %p2070_p3 = scmp.ne.s32.totalorder %s2653_s15, %s2069_s17  ;;  %s2074_s19 = sshll.u32 %s2260_s12, 4  ;;  %s2075_s19 = int_to_ptr.vmem [resolvable:$false] %s2074_s19 }
  0xbc   : > { %s2076_s26 = scalar_lea.vmem %s2075_s19, 4096  ;;  %p2077_p13 = scmp.lt.s32.totalorder %s2653_s15, %s2075_s19 }
  0xbd   : > { %p2072_p1 = pnand %p2070_p3, %p3170_p6  ;;  %p2078_p10 = scmp.lt.s32.totalorder %s2076_s26, %s2069_s17 }
  0xbf   : > { %p2073_p2 = pneg %p2072_p1  ;;  %p2079_p12 = por %p2078_p10, %p2077_p13 }
  0xc1   : > { %p2080_p8 = pnand %p2079_p12, %p2073_p2 }
  0xc3   : > { %2083 = shalt.err (!%p2080_p8)
}
  0xc4   : > { %1806 = dma.hbm_to_vmem [thread:$0]  (!%p3171_p0), %s2651_s4, 2048, %s2653_s15, %s2551_s29, %s2258_s18, %s2258_s18, %s2259_s28  }
  0xc5   : > { %p3172_p6 = scmp.ne.s32.totalorder %s3161_s7, 0 }
  0xc6   : > { %s2683_s5 = sand.u32 (!%p3172_p6), 1, %s2226_s9   ;;  %p3173_p4 = scmp.ne.s32.totalorder (!%p3172_p6), %s3143_s24, 0 }
  0xc7   : > { %422 = sbr.rel (%p3172_p6) target bundleno = 1504 (0x5e0), region = 48  ;;  %s2686_s23 = sshll.u32 (!%p3172_p6), %s2683_s5, 3 }
  0xc8   : > { %s425_s13 = scalar_lea.sflag (!%p3172_p6), [#allocation3], %s2683_s5  ;;  %s428_s8 = scalar_lea.vmem (!%p3172_p6), [#allocation2], %s2686_s23 }
  0xce   : > { %2185 = dma.done.wait (%p3173_p4), %s425_s13, 128  }
  0xcf   : > { %2187 = vsyncadd (%p3173_p4), %s425_s13, 4294967168  ;;  %s433_s29 = sand.u32 1, %s2370_s16   ;;  %s437_s18 = scalar_lea.vmem [#allocation5], %s2686_s23 }
  0xd0   : > { %s434_s7 = scalar_lea.sflag [#allocation6], %s433_s29 }
  0xd1   : > { %2189 = dma.done.wait (%p3173_p4), %s434_s7, 128  }
  0xd2   : > { %2191 = vsyncadd (%p3173_p4), %s434_s7, 4294967168  ;;  %s3174_s28 = sld [smem:[#allocation21_spill]]  ;;  %s3175_s27 = sld [smem:[#allocation32_spill]] }
  0xd8   : > { %s2701_s30 = sand.u32 1, %s3174_s28   ;;  %p3176_p0 = scmp.ne.s32.totalorder %s3175_s27, 0 }
  0xd9   : > { %s1613_s4 = sshll.u32 %s2701_s30, 5 }
  0xda   : > { %s2704_s21 = scalar_lea.vmem [#allocation7], %s1613_s4 }
  0xdb   : > { %2193 = dma.done.wait (%p3176_p0), %s434_s7, 512  }
  0xdc   : > { %2195 = vsyncadd (%p3176_p0), %s434_s7, 4294966784  ;;  %s1614_s16 = sshll.u32 %s2701_s30, 6  ;;  %s452_s15 = scalar_lea.sflag [#allocation9], %s433_s29 }
  0xdd   : > { %s2711_s1 = scalar_lea.vmem [#allocation8], %s1614_s16 }
  0xde   : > { %2197 = dma.done.wait (%p3176_p0), %s452_s15, 3072  }
  0xdf   : > { %2199 = vsyncadd (%p3176_p0), %s452_s15, 4294964224  ;;  %s3177_s24 = sld [smem:[#allocation25_spill]]  ;;  %s1615_s25 = sshll.u32 %s2701_s30, 7 }
  0xe0   : > { %s3178_s3 = sld [smem:[#allocation40_spill]]  ;;  %s3179_s26 = sld [smem:[#allocation38_spill]] }
  0xe1   : > { %s2732_s29 = scalar_lea.vmem [#allocation10], %s1615_s25  ;;  %s521_s7 = scalar_lea.vmem [#allocation11], %s2686_s23 }
  0xe2   : > { %s2735_s28 = scalar_lea.vmem [#allocation12], %s1615_s25  ;;  %s3180_s27 = sld [smem:[#allocation24_spill]] }
  0xe5   : > { %p529_p7 = scmp.lt.s32.totalorder %s3177_s24, 1 }
  0xe7   : > { %s3216_s24 = smov (!%p529_p7, %s3177_s24), 1 }
  0xe8   : > { %s1618_s11 = sshll.u32 %s3216_s24, 1  ;;  %s535_s17 = scalar_lea.vmem %s3178_s3, %s3216_s24 }
  0xe9   : > { %s2730_s13 = scalar_lea.vmem %s3179_s26, %s1618_s11  ;;  %p1619_p9 = scmp.ne.s32.totalorder %s3180_s27, 0 }
  0xea   : > { %v542_v0 = vld [vmem:[%s2732_s29] sm:$0xff] (!%p1619_p9)  ;;  %v543_v1 = vld [vmem:[%s2732_s29 + $0x8] sm:$0xff] (!%p1619_p9)  ;;  %v544_v2 = vld [vmem:[%s2732_s29 + $0x10] sm:$0xff] (!%p1619_p9) }
  0xeb   : > { %541 = sbr.rel (%p1619_p9) target bundleno = 243 (0xf3), region = 72  ;;  %558 = vst [vmem:[%s2735_s28] sm:$0xff] (!%p1619_p9), %v542_v0  ;;  %559 = vst [vmem:[%s2735_s28 + $0x8] sm:$0xff] (!%p1619_p9), %v543_v1  ;;  %v545_v3 = vld [vmem:[%s2732_s29 + $0x18] sm:$0xff] (!%p1619_p9)  ;;  %v546_v4 = vld [vmem:[%s2732_s29 + $0x20] sm:$0xff] (!%p1619_p9) }
  0xec   : > { %560 = vst [vmem:[%s2735_s28 + $0x10] sm:$0xff] (!%p1619_p9), %v544_v2  ;;  %v547_v5 = vld [vmem:[%s2732_s29 + $0x28] sm:$0xff] (!%p1619_p9)  ;;  %561 = vst [vmem:[%s2735_s28 + $0x18] sm:$0xff] (!%p1619_p9), %v545_v3  ;;  %v548_v6 = vld [vmem:[%s2732_s29 + $0x30] sm:$0xff] (!%p1619_p9) }
  0xed   : > { %562 = vst [vmem:[%s2735_s28 + $0x20] sm:$0xff] (!%p1619_p9), %v546_v4  ;;  %563 = vst [vmem:[%s2735_s28 + $0x28] sm:$0xff] (!%p1619_p9), %v547_v5  ;;  %v549_v7 = vld [vmem:[%s2732_s29 + $0x38] sm:$0xff] (!%p1619_p9)  ;;  %v550_v8 = vld [vmem:[%s2732_s29 + $0x40] sm:$0xff] (!%p1619_p9) }
  0xee   : > { %564 = vst [vmem:[%s2735_s28 + $0x30] sm:$0xff] (!%p1619_p9), %v548_v6  ;;  %565 = vst [vmem:[%s2735_s28 + $0x38] sm:$0xff] (!%p1619_p9), %v549_v7  ;;  %v551_v9 = vld [vmem:[%s2732_s29 + $0x48] sm:$0xff] (!%p1619_p9)  ;;  %v552_v10 = vld [vmem:[%s2732_s29 + $0x50] sm:$0xff] (!%p1619_p9) }
  0xef   : > { %566 = vst [vmem:[%s2735_s28 + $0x40] sm:$0xff] (!%p1619_p9), %v550_v8  ;;  %v553_v11 = vld [vmem:[%s2732_s29 + $0x58] sm:$0xff] (!%p1619_p9)  ;;  %567 = vst [vmem:[%s2735_s28 + $0x48] sm:$0xff] (!%p1619_p9), %v551_v9  ;;  %v554_v12 = vld [vmem:[%s2732_s29 + $0x60] sm:$0xff] (!%p1619_p9) }
  0xf0   : > { %568 = vst [vmem:[%s2735_s28 + $0x50] sm:$0xff] (!%p1619_p9), %v552_v10  ;;  %569 = vst [vmem:[%s2735_s28 + $0x58] sm:$0xff] (!%p1619_p9), %v553_v11  ;;  %v555_v13 = vld [vmem:[%s2732_s29 + $0x68] sm:$0xff] (!%p1619_p9)  ;;  %v556_v14 = vld [vmem:[%s2732_s29 + $0x70] sm:$0xff] (!%p1619_p9) }
  0xf1   : > { %570 = vst [vmem:[%s2735_s28 + $0x60] sm:$0xff] (!%p1619_p9), %v554_v12  ;;  %571 = vst [vmem:[%s2735_s28 + $0x68] sm:$0xff] (!%p1619_p9), %v555_v13  ;;  %v557_v15 = vld [vmem:[%s2732_s29 + $0x78] sm:$0xff] (!%p1619_p9) }
  0xf2   : > { %572 = vst [vmem:[%s2735_s28 + $0x70] sm:$0xff] %v556_v14  ;;  %573 = vst [vmem:[%s2735_s28 + $0x78] sm:$0xff] %v557_v15 }
  0xf3 PF: > { %v1916_v16 = vld [vmem:[%s2704_s21 + $0x14] ss:$8 sps:$4 sm:$0xff]   ;;  %v1918_v17 = vld [vmem:[%s2704_s21 + $0x4] ss:$8 sps:$4 sm:$0xff]   ;;  %v2261_v18 = vmov 0   ;;  %vm592_vm0 = vcmask 130048   ;;  %v693_v58 = vlaneseq }
  0xf4   : > { %628 = vmatprep.mubr.bf16.mxu0 %v2261_v18  ;;  %682 = vmatprep.mubr.bf16.mxu1 %v2261_v18  ;;  %v1920_v19 = vld [vmem:[%s2704_s21 + $0x10] ss:$8 sps:$4 sm:$0xff]   ;;  %v1921_v20 = vld [vmem:[%s2704_s21] ss:$8 sps:$4 sm:$0xff]   ;;  %v2262_v28 = vmov 0.0   ;;  %vm2263_vm1 = vmmov 0  }
  0xf5   : > { %596 = vmatprep.subr.bf16.mxu0 %v1916_v16  ;;  %v576_v21 = vld [vmem:[%s437_s18] sm:$0xff]  ;;  %1915 = vset.pattern.permute.xlu0 %v2261_v18  ;;  %v574_v23 = vld [vmem:[%s428_s8] sm:$0xff]  ;;  %v694_v59 = vshrl.u32 %v693_v58, 7  ;;  %vm934_vm2 = vcmask 1043456   ;;  %vm909_vm3 = vcmask 64512   ;;  %s3182_s21 = sld [smem:[#allocation25_spill]] }
  0xf6   : > { %650 = vmatprep.subr.bf16.mxu1 %v1918_v17  ;;  %v577_v22 = vpack.c.bf16 %v576_v21, %v576_v21  ;;  %597 = vmatpush1.bf16.msra.mxu0 %v1920_v19  ;;  %v575_v24 = vpack.c.bf16 %v574_v23, %v574_v23  ;;  %v1922_v25 = vld [vmem:[%s2711_s1] sm:$0xff]   ;;  %v2783_v26 = vld [vmem:[%s2735_s28] sm:$0xff]  ;;  %v2786_v27 = vld [vmem:[%s2735_s28 + $0x8] sm:$0xff]  ;;  %s3183_s16 = sld [smem:[#allocation24_spill]]  ;;  %s3184_s15 = sld [smem:[#allocation33_spill]] }
  0xf7   : > { %651 = vmatpush1.bf16.msra.mxu1 %v1921_v20  ;;  %1699 = vmatprep.subr.bf16.mxu0 %v2262_v28  ;;  %v844_v29 = vpack.c.bf16 %v2786_v27, %v2783_v26  ;;  %v2793_v30 = vld [vmem:[%s2735_s28 + $0x10] sm:$0xff]  ;;  %v2796_v31 = vld [vmem:[%s2735_s28 + $0x18] sm:$0xff]  ;;  %v2804_v34 = vld [vmem:[%s2735_s28 + $0x20] sm:$0xff]  ;;  %v695_v60 = vsub.s32 0, %v694_v59  ;;  %v699_v62 = vsub.s32 1, %v694_v59  ;;  %s3185_s22 = sld [smem:[#allocation41_spill]] }
  0xf8   : > { %1719 = vmatprep.subr.bf16.mxu1 %v2262_v28  ;;  %v1923_v32 = vld [vmem:[%s2711_s1 + $0x8] sm:$0xff]   ;;  %v845_v33 = vpack.c.bf16 %v2796_v31, %v2793_v30  ;;  %v2807_v35 = vld [vmem:[%s2735_s28 + $0x28] sm:$0xff]  ;;  %v1924_v36 = vld [vmem:[%s2711_s1 + $0x10] sm:$0xff]   ;;  %s1329_s12 = scalar_lea.sflag [#allocation4], %s2683_s5  ;;  %s2265_s26 = smov [#allocation11]  }
  0xf9   : > { %1622 = vmatmul.mubr.msk.bf16.vlgmr.msra.gmra.mrb[0].mxu0 %vm592_vm0, %v577_v22  ;;  %v846_v37 = vpack.c.bf16 %v2807_v35, %v2804_v34  ;;  %v2813_v38 = vld [vmem:[%s2735_s28 + $0x30] sm:$0xff]  ;;  %v2818_v39 = vld [vmem:[%s2735_s28 + $0x38] sm:$0xff]  ;;  %v1925_v40 = vld [vmem:[%s2711_s1 + $0x18] sm:$0xff]  }
  0xfa   : > { %1625 = vmatmul.mubr.msk.bf16.vlgmr.msra.gmra.mrb[0].mxu1 %vm592_vm0, %v575_v24  ;;  %1700 = vmatpush3.bf16.msra.mxu0 %v1922_v25  ;;  %v847_v41 = vpack.c.bf16 %v2818_v39, %v2813_v38  ;;  %v2826_v42 = vld [vmem:[%s2735_s28 + $0x40] sm:$0xff]  ;;  %v2829_v43 = vld [vmem:[%s2735_s28 + $0x48] sm:$0xff]  ;;  %v1926_v44 = vld [vmem:[%s2711_s1 + $0x20] sm:$0xff]  }
  0xfb   : > { %1720 = vmatpush3.bf16.msra.mxu1 %v844_v29  ;;  %1701 = vmatprep.subr.bf16.mxu0 %v2262_v28  ;;  %v848_v45 = vpack.c.bf16 %v2829_v43, %v2826_v42  ;;  %v2837_v46 = vld [vmem:[%s2735_s28 + $0x50] sm:$0xff]  ;;  %v2840_v47 = vld [vmem:[%s2735_s28 + $0x58] sm:$0xff]  ;;  %v1928_v50 = vld [vmem:[%s2711_s1 + $0x30] sm:$0xff]   ;;  %v2264_v29 = vmov 1065369472  }
  0xfc   : > { %1721 = vmatprep.subr.bf16.mxu1 %v2262_v28  ;;  %v1927_v48 = vld [vmem:[%s2711_s1 + $0x28] sm:$0xff]   ;;  %v849_v49 = vpack.c.bf16 %v2840_v47, %v2837_v46  ;;  %v2851_v51 = vld [vmem:[%s2735_s28 + $0x60] sm:$0xff]  ;;  %v2854_v52 = vld [vmem:[%s2735_s28 + $0x68] sm:$0xff]  ;;  %1715 = vmatprep.mubr.msk.bf16.mxu0 %vm2263_vm1, %v2262_v28  ;;  %p3186_p11 = scmp.ne.s32.totalorder %s3184_s15, 0 }
  0xfd   : > { %v850_v53 = vpack.c.bf16 %v2854_v52, %v2851_v51  ;;  %v1929_v54 = vld [vmem:[%s2711_s1 + $0x38] sm:$0xff]   ;;  %v2862_v55 = vld [vmem:[%s2735_s28 + $0x70] sm:$0xff]  ;;  %v2865_v56 = vld [vmem:[%s2735_s28 + $0x78] sm:$0xff]  ;;  %1735 = vmatprep.mubr.msk.bf16.mxu1 %vm2263_vm1, %v2262_v28  ;;  %s1653_s1 = sshll.u32 %s3182_s21, 3 }
  0xfe   : > { %1702 = vmatpush3.bf16.msra.mxu0 %v1923_v32  ;;  %v851_v57 = vpack.c.bf16 %v2865_v56, %v2862_v55  ;;  %v691_v61 = vld [vmem:[%s2730_s13] sm:$0x3]  ;;  %s1345_s24 = sadd.s32 %s3183_s16, %s1653_s1  ;;  %s2088_s13 = sshll.u32 %s2265_s26, 4  ;;  %s2089_s13 = int_to_ptr.vmem [resolvable:$false] %s2088_s13 }
  0xff   : > { %1722 = vmatpush3.bf16.msra.mxu1 %v845_v33  ;;  %1703 = vmatprep.subr.bf16.mxu0 %v2262_v28  ;;  %v696_v63 = vrot.slane %v691_v61, %v695_v60  ;;  %v700_v2 = vrot.slane %v691_v61, %v699_v62  ;;  %v1634_v15 = vld [vmem:[%s535_s17] ss:$0 sm:$0xff]  ;;  %s1654_s25 = sshll.u32 %s1345_s24, 7  ;;  %s1349_s17 = sshll.u32 %s521_s7, 4  ;;  %s1350_s17 = int_to_ptr.vmem [resolvable:$true] %s1349_s17 }
 0x100   : > { %1723 = vmatprep.subr.bf16.mxu1 %v2262_v28  ;;  %s2938_s3 = scalar_lea.hbm %s3185_s22, %s1654_s25  ;;  %s2084_s19 = scalar_lea.vmem %s1350_s17, 128 }
 0x101   : > { %p2085_p5 = scmp.ne.s32.totalorder %s1350_s17, %s2084_s19  ;;  %s2090_s29 = scalar_lea.vmem %s2089_s13, 256 }
 0x102   : > { %1704 = vmatpush3.bf16.msra.mxu0 %v1924_v36  ;;  %p2091_p2 = scmp.lt.s32.totalorder %s1350_s17, %s2089_s13  ;;  %p2092_p13 = scmp.lt.s32.totalorder %s2090_s29, %s2084_s19 }
 0x103   : > { %1724 = vmatpush3.bf16.msra.mxu1 %v846_v37  ;;  %1705 = vmatprep.subr.bf16.mxu0 %v2262_v28  ;;  %p2086_p3 = pnand %p2085_p5, %p3186_p11 }
 0x104   : > { %1725 = vmatprep.subr.bf16.mxu1 %v2262_v28  ;;  %p2093_p10 = por %p2092_p13, %p2091_p2 }
 0x105   : > { %p2087_p1 = pneg %p2086_p3 }
 0x106   : > { %1706 = vmatpush3.bf16.msra.mxu0 %v1925_v40 }
 0x107   : > { %1726 = vmatpush3.bf16.msra.mxu1 %v847_v41  ;;  %1707 = vmatprep.subr.bf16.mxu0 %v2262_v28  ;;  %p2094_p12 = pnand %p2093_p10, %p2087_p1 }
 0x108   : > { %1727 = vmatprep.subr.bf16.mxu1 %v2262_v28 }
 0x10a   : > { %1708 = vmatpush3.bf16.msra.mxu0 %v1926_v44 }
 0x10b   : > { %1728 = vmatpush3.bf16.msra.mxu1 %v848_v45  ;;  %1709 = vmatprep.subr.bf16.mxu0 %v2262_v28 }
 0x10c   : > { %1729 = vmatprep.subr.bf16.mxu1 %v2262_v28 }
 0x10e   : > { %1710 = vmatpush3.bf16.msra.mxu0 %v1927_v48 }
 0x10f   : > { %1730 = vmatpush3.bf16.msra.mxu1 %v849_v49  ;;  %1711 = vmatprep.subr.bf16.mxu0 %v2262_v28 }
 0x110   : > { %1731 = vmatprep.subr.bf16.mxu1 %v2262_v28 }
 0x112   : > { %1712 = vmatpush3.bf16.msra.mxu0 %v1928_v50 }
 0x113   : > { %1713 = vmatprep.subr.bf16.mxu0 %v2262_v28  ;;  %1732 = vmatpush3.bf16.msra.mxu1 %v850_v53 }
 0x114   : > { %1733 = vmatprep.subr.bf16.mxu1 %v2262_v28  ;;  %v936_v28 = vsel %vm934_vm2, 1065369472, %v2261_v18 }
 0x116   : > { %1714 = vmatpush3.bf16.msra.mxu0 %v1929_v54 }
 0x117   : > { %1734 = vmatpush3.bf16.msra.mxu1 %v851_v57  ;;  %1775 = vmatprep.subr.msk.bf16.mxu0 %vm934_vm2, %v2264_v29 }
 0x1cc   : > { %v630_v0 = vpop.f32.mrb[0].mxu0 }
 0x1cd   : > { %v684_v1 = vpop.f32.mrb[0].mxu1  ;;  %v632_v4 = vpop.f32.mrb[1].mxu0 }
 0x1ce   : > { %v685_v3 = vadd.f32 %v684_v1, %v630_v0  ;;  %v686_v5 = vpop.f32.mrb[1].mxu1  ;;  %v634_v7 = vpop.f32.mrb[2].mxu0 }
 0x1cf   : > { %v687_v6 = vadd.f32 %v686_v5, %v632_v4  ;;  %v688_v8 = vpop.f32.mrb[2].mxu1  ;;  %v635_v10 = vpop.f32.mrb[3].mxu0 }
 0x1d0   : > { %v703_v9 = vadd.f32 %v696_v63, %v685_v3  ;;  %v689_v11 = vpop.f32.mrb[3].mxu1 }
 0x1d1   : > { %v704_v12 = vadd.f32 %v700_v2, %v687_v6 }
 0x1d2   : > { %v721_v13 = vpack.c.bf16 %v703_v9, %v703_v9 }
 0x1d3   : > { %v1051_v14 = vpack.c.bf16 %v704_v12, %v704_v12 }
 0x1d4   : > { %1716 = vmatmul.mubr.bf16.vlgmr.msra.gmra.mrb[4].mxu0 %v721_v13 }
 0x1d5   : > { %1776 = vmatprep.subr.msk.bf16.mxu1 %vm934_vm2, %v1051_v14  ;;  %1740 = vmatpush3.bf16.msra.mxu0 %v936_v28  ;;  %v1053_v40 = vsel %vm934_vm2, %v1051_v14, 0 }
 0x2a7   : > { %v804_v16 = vpop.f32.mrb[4].mxu0 }
 0x2a8   : > { %v817_v17 = vsub.f32 %v804_v16, %v1634_v15  ;;  %v1717_v19 = vpop.f32.mrb[5].mxu0 }
 0x2a9   : > { %v807_v20 = vpop.f32.mrb[6].mxu0 }
 0x2aa   : > { %818 = vmax.xlane.f32.xlu0 %v817_v17  ;;  %v1718_v21 = vpop.f32.mrb[7].mxu0 }
 0x337   : > { %v819_v22 = vpop.xlane.xlu0 %818 }
 0x338   : > { %v820_v23 = vsub.f32 %v817_v17, %v819_v22 }
 0x33a   : > { %v821_v24 = vmul.f32 1.442695, %v820_v23 }
 0x33c   : > { %1930 = vpow2.f32 %v821_v24 }
 0x346   : > { %v1931_v25 = vpop.eup %1930 }
 0x347   : > { %823 = vadd.xlane.f32.xlu0 %v1931_v25 }
 0x3d4   : > { %v824_v32 = vpop.xlane.xlu0 %823 }
 0x3d5   : > { %1932 = vrcp.f32 %v824_v32 }
 0x3df   : > { %v1933_v33 = vpop.eup %1932 }
 0x3e0   : > { %v826_v36 = vmul.f32 %v1933_v33, %v1931_v25 }
 0x3e2   : > { %v843_v37 = vpack.c.bf16 %v826_v36, %v826_v36 }
 0x3e4   : > { %893 = vxpose.xlu1.c.b16.start.end [1/1] (short) %v843_v37, 128  ;;  %1736 = vmatmul.mubr.bf16.vlgmr.msra.gmra.mrb[4].mxu1 %v843_v37 }
 0x3e5   : > { %1758 = vmatpush3.bf16.msra.mxu1 %v1053_v40 }
 0x3e8   : > { %1914 = vset.pattern.permute.xlu1 %v2261_v18 }
 0x44a   : > { %v901_v41 = vpop.trf.xlu1 }
 0x44b   : > { %1741 = vmatprep.mubr.msk.bf16.mxu0 %vm909_vm3, %v901_v41  ;;  %1759 = vmatprep.mubr.msk.bf16.mxu1 %vm909_vm3, %v901_v41 }
 0x44e   : > { %v902_v44 = vpop.trf.xlu1 }
 0x44f   : > { %1742 = vmatmul.mubr.msk.bf16.vlgmr.msra.gmra.mrb[8].mxu0 %vm909_vm3, %v902_v44  ;;  %1760 = vmatmul.mubr.msk.bf16.vlgmr.msra.gmra.mrb[8].mxu1 %vm909_vm3, %v902_v44 }
 0x452   : > { %v903_v45 = vpop.trf.xlu1 }
 0x453   : > { %1745 = vmatprep.mubr.msk.bf16.mxu0 %vm909_vm3, %v903_v45  ;;  %1763 = vmatprep.mubr.msk.bf16.mxu1 %vm909_vm3, %v903_v45 }
 0x456   : > { %v904_v48 = vpop.trf.xlu1 }
 0x457   : > { %1746 = vmatmul.mubr.msk.bf16.gmra.mrb[12].mxu0 %vm909_vm3, %v904_v48  ;;  %1764 = vmatmul.mubr.msk.bf16.gmra.mrb[12].mxu1 %vm909_vm3, %v904_v48 }
 0x45a   : > { %v905_v18 = vpop.trf.xlu1 }
 0x45b   : > { %1749 = vmatprep.mubr.msk.bf16.mxu0 %vm909_vm3, %v905_v18  ;;  %1767 = vmatprep.mubr.msk.bf16.mxu1 %vm909_vm3, %v905_v18 }
 0x45e   : > { %v906_v49 = vpop.trf.xlu1 }
 0x45f   : > { %1750 = vmatmul.mubr.msk.bf16.gmra.mrb[16].mxu0 %vm909_vm3, %v906_v49  ;;  %1768 = vmatmul.mubr.msk.bf16.gmra.mrb[16].mxu1 %vm909_vm3, %v906_v49 }
 0x462   : > { %v907_v50 = vpop.trf.xlu1 }
 0x463   : > { %1753 = vmatprep.mubr.msk.bf16.mxu0 %vm909_vm3, %v907_v50  ;;  %1771 = vmatprep.mubr.msk.bf16.mxu1 %vm909_vm3, %v907_v50 }
 0x466   : > { %v908_v53 = vpop.trf.xlu1 }
 0x467   : > { %1754 = vmatmul.mubr.msk.bf16.gmra.mrb[20].mxu0 %vm909_vm3, %v908_v53  ;;  %1772 = vmatmul.mubr.msk.bf16.gmra.mrb[20].mxu1 %vm909_vm3, %v908_v53 }
 0x4b7   : > { %v886_v54 = vpop.f32.mrb[4].mxu1 }
 0x4b8   : > { %892 = vst [vmem:[%s521_s7] sm:$0xff] %v886_v54  ;;  %v1737_v57 = vpop.f32.mrb[5].mxu1 }
 0x4b9   : > { %v889_v58 = vpop.f32.mrb[6].mxu1 }
 0x4ba   : > { %v1738_v59 = vpop.f32.mrb[7].mxu1 }
 0x522   : > { %v1743_v60 = vpop.f32.mrb[8].mxu0  ;;  %v2901_v61 = vpop.f32.mrb[8].mxu1 }
 0x523   : > { %v1037_v62 = vmul.f32 0.0125, %v1743_v60  ;;  %v972_v63 = vpop.f32.mrb[9].mxu0  ;;  %v2903_v0 = vpop.f32.mrb[9].mxu1 }
 0x524   : > { %v1035_v1 = vmul.f32 0.0125, %v972_v63  ;;  %v1744_v2 = vpop.f32.mrb[10].mxu0  ;;  %v2905_v3 = vpop.f32.mrb[10].mxu1 }
 0x525   : > { %v1170_v4 = vsub.f32 1.0, %v1037_v62  ;;  %v975_v5 = vpop.f32.mrb[11].mxu0  ;;  %v2907_v7 = vpop.f32.mrb[11].mxu1  ;;  %v1038_v10 = vmul.f32 0.0125, %v1744_v2 }
 0x526   : > { %v1036_v6 = vmul.f32 0.0125, %v975_v5  ;;  %v1168_v9 = vsub.f32 1.0, %v1035_v1 }
 0x527   : > { %v1186_v8 = vmax.f32 %v1170_v4, 0.0  ;;  %v1171_v16 = vsub.f32 1.0, %v1038_v10 }
 0x528   : > { %v1169_v11 = vsub.f32 1.0, %v1036_v6  ;;  %v1184_v15 = vmax.f32 %v1168_v9, 0.0 }
 0x529   : > { %1212 = vperm.xlu1 %1914, %v1186_v8   ;;  %v1187_v32 = vmax.f32 %v1171_v16, 0.0 }
 0x52a   : > { %v1185_v12 = vmax.f32 %v1169_v11, 0.0  ;;  %v1747_v13 = vpop.f32.mrb[12].mxu0  ;;  %v2909_v14 = vpop.f32.mrb[12].mxu1 }
 0x52b   : > { %v1041_v17 = vmul.f32 0.0125, %v1747_v13  ;;  %v988_v19 = vpop.f32.mrb[13].mxu0  ;;  %v2911_v20 = vpop.f32.mrb[13].mxu1 }
 0x52c   : > { %v1039_v21 = vmul.f32 0.0125, %v988_v19  ;;  %v2913_v22 = vpop.f32.mrb[14].mxu1  ;;  %1207 = vperm.xlu0 %1915, %v1185_v12   ;;  %v1748_v23 = vpop.f32.mrb[14].mxu0 }
 0x52d   : > { %v1174_v24 = vsub.f32 1.0, %v1041_v17  ;;  %v2915_v25 = vpop.f32.mrb[15].mxu1  ;;  %1202 = vperm.xlu1 %1914, %v1184_v15   ;;  %v991_v29 = vpop.f32.mrb[15].mxu0  ;;  %v1042_v36 = vmul.f32 0.0125, %v1748_v23 }
 0x52e   : > { %v1172_v28 = vsub.f32 1.0, %v1039_v21  ;;  %v1040_v40 = vmul.f32 0.0125, %v991_v29 }
 0x52f   : > { %v1190_v33 = vmax.f32 %v1174_v24, 0.0  ;;  %v1175_v45 = vsub.f32 1.0, %v1042_v36 }
 0x530   : > { %v1188_v37 = vmax.f32 %v1172_v28, 0.0  ;;  %v1173_v58 = vsub.f32 1.0, %v1040_v40 }
 0x531   : > { %1217 = vperm.xlu1 %1914, %v1187_v32   ;;  %1232 = vperm.xlu0 %1915, %v1190_v33   ;;  %v1191_v62 = vmax.f32 %v1175_v45, 0.0 }
 0x532   : > { %v1751_v41 = vpop.f32.mrb[16].mxu0  ;;  %v2917_v44 = vpop.f32.mrb[16].mxu1  ;;  %v1189_v5 = vmax.f32 %v1173_v58, 0.0 }
 0x533   : > { %v1045_v48 = vmul.f32 0.0125, %v1751_v41  ;;  %v2919_v18 = vpop.f32.mrb[17].mxu1  ;;  %v1004_v49 = vpop.f32.mrb[17].mxu0 }
 0x534   : > { %v2921_v50 = vpop.f32.mrb[18].mxu1  ;;  %v1043_v54 = vmul.f32 0.0125, %v1004_v49  ;;  %v1752_v57 = vpop.f32.mrb[18].mxu0 }
 0x535   : > { %v1178_v53 = vsub.f32 1.0, %v1045_v48  ;;  %1222 = vperm.xlu1 %1914, %v1188_v37   ;;  %v1007_v59 = vpop.f32.mrb[19].mxu0  ;;  %v2923_v60 = vpop.f32.mrb[19].mxu1  ;;  %v1046_v2 = vmul.f32 0.0125, %v1752_v57 }
 0x536   : > { %v1176_v1 = vsub.f32 1.0, %v1043_v54  ;;  %v1044_v10 = vmul.f32 0.0125, %v1007_v59 }
 0x537   : > { %v1194_v63 = vmax.f32 %v1178_v53, 0.0  ;;  %v1179_v9 = vsub.f32 1.0, %v1046_v2 }
 0x538   : > { %v1192_v4 = vmax.f32 %v1176_v1, 0.0  ;;  %v1177_v29 = vsub.f32 1.0, %v1044_v10 }
 0x539   : > { %1237 = vperm.xlu1 %1914, %v1191_v62   ;;  %1252 = vperm.xlu0 %1915, %v1194_v63   ;;  %v1195_v28 = vmax.f32 %v1179_v9, 0.0 }
 0x53a   : > { %v1755_v6 = vpop.f32.mrb[20].mxu0  ;;  %v2925_v8 = vpop.f32.mrb[20].mxu1  ;;  %v1193_v37 = vmax.f32 %v1177_v29, 0.0 }
 0x53b   : > { %v1049_v11 = vmul.f32 0.0125, %v1755_v6  ;;  %v1020_v12 = vpop.f32.mrb[21].mxu0  ;;  %v2927_v15 = vpop.f32.mrb[21].mxu1 }
 0x53c   : > { %v1047_v13 = vmul.f32 0.0125, %v1020_v12  ;;  %v1756_v16 = vpop.f32.mrb[22].mxu0  ;;  %v2929_v17 = vpop.f32.mrb[22].mxu1 }
 0x53d   : > { %1227 = vperm.xlu1 %1914, %v1189_v5   ;;  %1242 = vperm.xlu0 %1915, %v1192_v4   ;;  %v1182_v19 = vsub.f32 1.0, %v1049_v11  ;;  %v1023_v23 = vpop.f32.mrb[23].mxu0  ;;  %v2931_v24 = vpop.f32.mrb[23].mxu1  ;;  %v1050_v40 = vmul.f32 0.0125, %v1756_v16 }
 0x53e   : > { %v1180_v21 = vsub.f32 1.0, %v1047_v13  ;;  %v1048_v32 = vmul.f32 0.0125, %v1023_v23 }
 0x53f   : > { %v1198_v36 = vmax.f32 %v1182_v19, 0.0  ;;  %v1183_v45 = vsub.f32 1.0, %v1050_v40 }
 0x540   : > { %v1196_v33 = vmax.f32 %v1180_v21, 0.0  ;;  %v1181_v41 = vsub.f32 1.0, %v1048_v32 }
 0x541   : > { %1257 = vperm.xlu1 %1914, %v1195_v28   ;;  %v1199_v49 = vmax.f32 %v1183_v45, 0.0 }
 0x542   : > { %1262 = vperm.xlu0 %1915, %v1196_v33   ;;  %v1197_v48 = vmax.f32 %v1181_v41, 0.0 }
 0x545   : > { %1247 = vperm.xlu1 %1914, %v1193_v37  }
 0x546   : > { %1272 = vperm.xlu0 %1915, %v1198_v36  }
 0x549   : > { %1267 = vperm.xlu1 %1914, %v1197_v48  }
 0x54d   : > { %1277 = vperm.xlu1 %1914, %v1199_v49  }
 0x54e   : > { %2097 = shalt.err (!%p2094_p12)
}
 0x54f   : > { %s2098_s5 = scalar_lea.hbm %s2938_s3, 128  ;;  %s2102_s27 = scalar_lea.hbm %s3185_s22, 2048 }
 0x550   : > { %p2099_p8 = scmp.ne.s32.totalorder %s2938_s3, %s2098_s5  ;;  %p2103_p0 = scmp.lt.u32.totalorder %s2938_s3, %s3185_s22 }
 0x551   : > { %p2104_p7 = scmp.lt.u32.totalorder %s2102_s27, %s2098_s5  ;;  %p2106_p5 = scmp.lt.u32.totalorder %s2098_s5, %s2938_s3 }
 0x552   : > { %p2100_p6 = pnand %p2099_p8, %p3186_p11 }
 0x553   : > { %p2105_p9 = por %p2104_p7, %p2103_p0 }
 0x554   : > { %p2101_p4 = pneg %p2100_p6 }
 0x555   : > { %p2107_p3 = por %p2106_p5, %p2105_p9 }
 0x557   : > { %p2108_p1 = pnand %p2107_p3, %p2101_p4 }
 0x559   : > { %2111 = shalt.err (!%p2108_p1)
}
 0x55a   : > { %1787 = dma.vmem_to_hbm [thread:$0]  (%p3186_p11), %s1350_s17, 128, %s2938_s3, %s1329_s12   ;;  %v1154_v54 = vmul.f32 0.0125, %v2901_v61  ;;  %v1153_v62 = vmul.f32 0.0125, %v2907_v7 }
 0x55b   : > { %v1152_v2 = vmul.f32 0.0125, %v2903_v0  ;;  %v1155_v9 = vmul.f32 0.0125, %v2905_v3  ;;  %v1158_v10 = vmul.f32 0.0125, %v2909_v14 }
 0x55c   : > { %v1159_v19 = vmul.f32 0.0125, %v2913_v22  ;;  %v1160_v32 = vmul.f32 0.0125, %v2919_v18  ;;  %v1164_v18 = vmul.f32 0.0125, %v2927_v15 }
 0x55d   : > { %v1161_v45 = vmul.f32 0.0125, %v2923_v60  ;;  %s3187_s4 = sld [smem:[#allocation34_spill]]  ;;  %s1662_s16 = sshll.u32 %s3182_s21, 11 }
 0x55e   : > { %s1362_s15 = sshll.u32 %s2735_s28, 4  ;;  %s3188_s25 = sld [smem:[#allocation42_spill]]  ;;  %s3014_s15 = int_to_ptr.vmem [resolvable:$true] %s1362_s15 }
 0x55f   : > { %s1334_s21 = scalar_lea.sflag [#allocation13], %s2701_s30  ;;  %s2112_s20 = scalar_lea.vmem %s3014_s15, 2048 }
 0x560   : > { %p2113_p11 = scmp.ne.s32.totalorder %s3014_s15, %s2112_s20  ;;  %s2266_s3 = smov [#allocation12]  }
 0x561   : > { %s2116_s17 = sshll.u32 %s2266_s3, 4  ;;  %s2117_s17 = int_to_ptr.vmem [resolvable:$false] %s2116_s17 }
 0x562   : > { %s2118_s12 = scalar_lea.vmem %s2117_s17, 4096  ;;  %p2119_p12 = scmp.lt.s32.totalorder %s3014_s15, %s2117_s17 }
 0x563   : > { %p3189_p2 = scmp.ne.s32.totalorder %s3187_s4, 0  ;;  %p2120_p8 = scmp.lt.s32.totalorder %s2118_s12, %s2112_s20 }
 0x564   : > { %s3012_s11 = scalar_lea.hbm %s3188_s25, %s1662_s16 }
 0x565   : > { %p2114_p13 = pnand %p2113_p11, %p3189_p2  ;;  %p2121_p6 = por %p2120_p8, %p2119_p12 }
 0x567   : > { %p2115_p10 = pneg %p2114_p13 }
 0x569   : > { %p2122_p4 = pnand %p2121_p6, %p2115_p10 }
 0x5a8   : > { %v1213_v53 = vpop.permute.xlu1 %1212 }
 0x5a9   : > { %v1282_v57 = vmul.f32 %v1213_v53, %v2793_v30 }
 0x5ab   : > { %v1298_v58 = vadd.f32 %v1282_v57, %v1154_v54  ;;  %v1208_v59 = vpop.permute.xlu0 %1207  ;;  %v1165_v54 = vmul.f32 0.0125, %v2931_v24 }
 0x5ac   : > { %v1281_v63 = vmul.f32 %v1208_v59, %v2786_v27  ;;  %v1203_v1 = vpop.permute.xlu1 %1202 }
 0x5ad   : > { %1314 = vst [vmem:[%s2735_s28 + $0x10] sm:$0xff] %v1298_v58  ;;  %v1280_v4 = vmul.f32 %v1203_v1, %v2783_v26  ;;  %v1156_v26 = vmul.f32 0.0125, %v2911_v20 }
 0x5ae   : > { %v1297_v5 = vadd.f32 %v1281_v63, %v1153_v62 }
 0x5af   : > { %v1296_v6 = vadd.f32 %v1280_v4, %v1152_v2 }
 0x5b0   : > { %1313 = vst [vmem:[%s2735_s28 + $0x8] sm:$0xff] %v1297_v5  ;;  %v1218_v61 = vpop.permute.xlu1 %1217  ;;  %v1233_v30 = vpop.permute.xlu0 %1232 }
 0x5b1   : > { %1312 = vst [vmem:[%s2735_s28] sm:$0xff] %v1296_v6  ;;  %v1283_v27 = vmul.f32 %v1218_v61, %v2796_v31  ;;  %v1286_v0 = vmul.f32 %v1233_v30, %v2813_v38  ;;  %v1162_v31 = vmul.f32 0.0125, %v2917_v44 }
 0x5b3   : > { %v1299_v7 = vadd.f32 %v1283_v27, %v1155_v9  ;;  %v1302_v11 = vadd.f32 %v1286_v0, %v1158_v10 }
 0x5b4   : > { %v1223_v12 = vpop.permute.xlu1 %1222 }
 0x5b5   : > { %1315 = vst [vmem:[%s2735_s28 + $0x18] sm:$0xff] %v1299_v7  ;;  %1318 = vst [vmem:[%s2735_s28 + $0x30] sm:$0xff] %v1302_v11  ;;  %v1284_v13 = vmul.f32 %v1223_v12, %v2804_v34  ;;  %v1157_v34 = vmul.f32 0.0125, %v2915_v25 }
 0x5b7   : > { %v1300_v3 = vadd.f32 %v1284_v13, %v1156_v26 }
 0x5b8   : > { %v1238_v16 = vpop.permute.xlu1 %1237  ;;  %v1253_v14 = vpop.permute.xlu0 %1252 }
 0x5b9   : > { %1316 = vst [vmem:[%s2735_s28 + $0x20] sm:$0xff] %v1300_v3  ;;  %v1287_v38 = vmul.f32 %v1238_v16, %v2818_v39  ;;  %v1290_v21 = vmul.f32 %v1253_v14, %v2837_v46  ;;  %v1163_v46 = vmul.f32 0.0125, %v2921_v50 }
 0x5bb   : > { %v1303_v20 = vadd.f32 %v1287_v38, %v1159_v19  ;;  %v1306_v23 = vadd.f32 %v1290_v21, %v1162_v31 }
 0x5bc   : > { %v1228_v28 = vpop.permute.xlu1 %1227  ;;  %v1243_v29 = vpop.permute.xlu0 %1242 }
 0x5bd   : > { %1319 = vst [vmem:[%s2735_s28 + $0x38] sm:$0xff] %v1303_v20  ;;  %1322 = vst [vmem:[%s2735_s28 + $0x50] sm:$0xff] %v1306_v23  ;;  %v1285_v22 = vmul.f32 %v1228_v28, %v2807_v35  ;;  %v1288_v44 = vmul.f32 %v1243_v29, %v2826_v42 }
 0x5bf   : > { %v1301_v39 = vadd.f32 %v1285_v22, %v1157_v34  ;;  %v1304_v33 = vadd.f32 %v1288_v44, %v1160_v32 }
 0x5c0   : > { %v1258_v36 = vpop.permute.xlu1 %1257 }
 0x5c1   : > { %1317 = vst [vmem:[%s2735_s28 + $0x28] sm:$0xff] %v1301_v39  ;;  %1320 = vst [vmem:[%s2735_s28 + $0x40] sm:$0xff] %v1304_v33  ;;  %v1291_v37 = vmul.f32 %v1258_v36, %v2840_v47  ;;  %v1263_v25 = vpop.permute.xlu0 %1262  ;;  %v1166_v47 = vmul.f32 0.0125, %v2925_v8  ;;  %v1167_v8 = vmul.f32 0.0125, %v2929_v17 }
 0x5c2   : > { %v1292_v40 = vmul.f32 %v1263_v25, %v2851_v51 }
 0x5c3   : > { %v1307_v35 = vadd.f32 %v1291_v37, %v1163_v46 }
 0x5c4   : > { %v1308_v41 = vadd.f32 %v1292_v40, %v1164_v18  ;;  %v1248_v42 = vpop.permute.xlu1 %1247 }
 0x5c5   : > { %1323 = vst [vmem:[%s2735_s28 + $0x58] sm:$0xff] %v1307_v35  ;;  %v1289_v50 = vmul.f32 %v1248_v42, %v2829_v43  ;;  %v1273_v48 = vpop.permute.xlu0 %1272 }
 0x5c6   : > { %1324 = vst [vmem:[%s2735_s28 + $0x60] sm:$0xff] %v1308_v41  ;;  %v1294_v15 = vmul.f32 %v1273_v48, %v2862_v55 }
 0x5c7   : > { %v1305_v49 = vadd.f32 %v1289_v50, %v1161_v45 }
 0x5c8   : > { %v1310_v51 = vadd.f32 %v1294_v15, %v1166_v47  ;;  %v1268_v53 = vpop.permute.xlu1 %1267 }
 0x5c9   : > { %1321 = vst [vmem:[%s2735_s28 + $0x48] sm:$0xff] %v1305_v49  ;;  %v1293_v60 = vmul.f32 %v1268_v53, %v2854_v52 }
 0x5ca   : > { %1326 = vst [vmem:[%s2735_s28 + $0x70] sm:$0xff] %v1310_v51 }
 0x5cb   : > { %v1309_v43 = vadd.f32 %v1293_v60, %v1165_v54 }
 0x5cc   : > { %v1278_v57 = vpop.permute.xlu1 %1277 }
 0x5cd   : > { %1325 = vst [vmem:[%s2735_s28 + $0x68] sm:$0xff] %v1309_v43  ;;  %v1295_v55 = vmul.f32 %v1278_v57, %v2865_v56 }
 0x5cf   : > { %v1311_v52 = vadd.f32 %v1295_v55, %v1167_v8 }
 0x5d1   : > { %1327 = vst [vmem:[%s2735_s28 + $0x78] sm:$0xff] %v1311_v52 }
 0x5d2   : > { %2125 = shalt.err (!%p2122_p4)
}
 0x5d3   : > { %s2126_s28 = scalar_lea.hbm %s3012_s11, 2048  ;;  %s2130_s13 = scalar_lea.hbm %s3188_s25, 4096 }
 0x5d4   : > { %p2127_p0 = scmp.ne.s32.totalorder %s3012_s11, %s2126_s28  ;;  %p2131_p5 = scmp.lt.u32.totalorder %s3012_s11, %s3188_s25 }
 0x5d5   : > { %p2132_p3 = scmp.lt.u32.totalorder %s2130_s13, %s2126_s28  ;;  %p2134_p11 = scmp.lt.u32.totalorder %s2126_s28, %s3012_s11 }
 0x5d6   : > { %p2128_p7 = pnand %p2127_p0, %p3189_p2 }
 0x5d7   : > { %p2133_p1 = por %p2132_p3, %p2131_p5 }
 0x5d8   : > { %p2129_p9 = pneg %p2128_p7 }
 0x5d9   : > { %p2135_p13 = por %p2134_p11, %p2133_p1 }
 0x5db   : > { %p2136_p10 = pnand %p2135_p13, %p2129_p9 }
 0x5dd   : > { %2139 = shalt.err (!%p2136_p10)
}
 0x5de   : > { %s2267_s23 = smov 128   ;;  %s2268_s7 = smov 8  }
 0x5df   : > { %1788 = dma.vmem_to_hbm [thread:$0]  (%p3189_p2), %s3014_s15, 2048, %s3012_s11, %s1334_s21, %s2267_s23, %s2267_s23, %s2268_s7  }
 0x5e0 PF: > { %s3190_s27 = sld [smem:[#allocation27_spill]]  ;;  %s3191_s8 = sld [smem:[#allocation23_spill]] }
 0x5e1   : > { %s3192_s18 = sld [smem:[#allocation35_spill]] }
 0x5e6   : > { %p1815_p12 = scmp.ge.s32.totalorder %s3190_s27, 2  ;;  %s1377_s16 = sand.u32 1, %s3191_s8  }
 0x5e7   : > { %p3193_p8 = scmp.ne.s32.totalorder %s3192_s18, 0  ;;  %s1378_s1 = scalar_lea.sflag [#allocation4], %s1377_s16 }
 0x5e9   : > { %p1808_p6 = pnand %p1815_p12, %p3193_p8 }
 0x5eb   : > { %2201 = dma.done.wait (!%p1808_p6), %s1378_s1, 128  }
 0x5ec   : > { %2203 = vsyncadd (!%p1808_p6), %s1378_s1, 4294967168  ;;  %s3194_s24 = sld [smem:[#allocation20_spill]]  ;;  %s3195_s20 = sld [smem:[#allocation36_spill]] }
 0x5f2   : > { %s1386_s3 = sand.u32 1, %s3194_s24   ;;  %p3196_p4 = scmp.ne.s32.totalorder %s3195_s20, 0 }
 0x5f3   : > { %s1387_s17 = scalar_lea.sflag [#allocation13], %s1386_s3 }
 0x5f4   : > { %p1811_p0 = pnand %p1815_p12, %p3196_p4 }
 0x5f6   : > { %2205 = dma.done.wait (!%p1811_p0), %s1387_s17, 2048  }
 0x5f7   : > { %2207 = vsyncadd (!%p1811_p0), %s1387_s17, 4294965248  ;;  %s34_s15 = sadd.s32 1, %s3190_s27   ;;  %s3197_s27 = sld [smem:[#allocation21_spill]] }
 0x5f8   : > { %p31_p2 = scmp.ge.s32.totalorder %s34_s15, 18   ;;  %s3198_s28 = sld [smem:[#allocation22_spill]] }
 0x5f9   : > { %s3199_s29 = sld [smem:[#allocation30_spill]]  ;;  %s3200_s4 = sld [smem:[#allocation31_spill]] }
 0x5fa   : > { %s3201_s11 = sld [smem:[#allocation26_spill]]  ;;  %s3202_s13 = sld [smem:[#allocation28_spill]] }
 0x5fb   : > { %s3203_s21 = sld [smem:[#allocation29_spill]]  ;;  %s3204_s30 = smov %s2226_s9 }
 0x5fc   : > { %s3205_s9 = smov %s2230_s10  ;;  %s3207_s12 = smov %s2246_s14 }
 0x5fd   :  { %33 = sbr.rel (!%p31_p2) target bundleno = 22 (0x16), region = 168 }
 0x5ff   : > { %s3206_s10 = smov %s3200_s4 }
 0x601   : > { %s3208_s14 = smov %s3203_s21 }
 0x604   :  { %1392 = vsyncpa [#allocation3], 1 }
 0x605   :  { %1394 = vsyncpa [#allocation3 + $0x1], 1 }
 0x606   :  { %1395 = vsyncpa [#allocation6], 1 }
 0x607   :  { %1397 = vsyncpa [#allocation6 + $0x1], 1 }
 0x608   :  { %1398 = vsyncpa [#allocation9], 1 }
 0x609   :  { %1400 = vsyncpa [#allocation9 + $0x1], 1 }
 0x60a   :  { %1401 = vsyncpa [#allocation4], 1 }
 0x60b   :  { %1403 = vsyncpa [#allocation4 + $0x1], 1 }
 0x60c   :  { %1404 = vsyncpa [#allocation13], 1 }
 0x60d   :  { %1406 = vsyncpa [#allocation13 + $0x1], 1 }

</bundles_post_ra>
